<compile_context>
chip_gen: v6e
topology: v6e:2x2x1
jax: 0.10.0
libtpu: 0.0.40
codegen_flags: <defaults>
</compile_context>

<pallas_src>
import functools

import jax
import jax.numpy as jnp
from jax.experimental import pallas as pl
from jax.experimental.pallas import tpu as pltpu

_LANE = 128
_VMEM_BUDGET = 12 * 1024 * 1024  # conservative per-kernel working-set target


def _round_up(v, m):
    return (v + m - 1) // m * m


def _pad2(a, rows, cols):
    return jnp.pad(a, ((0, rows - a.shape[0]), (0, cols - a.shape[1])))


def _choose_tiles(n, d_pad):
    """Pick (row_tile, n_pad, k_tile): 128-multiples, VMEM-aware, k_tile | n_pad."""
    row_tile = 512 if n >= 1024 else (256 if n >= 256 else 128)
    k_tile = 2048

    def est(rt, kt):
        return (2 * rt * kt * 2          # folded adjacency block, double-buffered bf16
                + 2 * kt * d_pad * 2     # folded HW block, double-buffered bf16
                + 2 * 2 * rt * d_pad * 2  # h + x row tiles (bf16, double-buffered)
                + 2 * 2 * d_pad * d_pad * 2  # w_root + w_skip (bf16, double-buffered)
                + rt * d_pad * 4         # fp32 accumulator scratch
                + 2 * rt * d_pad * 4)    # output block (fp32 worst case)

    while k_tile > 128 and est(row_tile, k_tile) > _VMEM_BUDGET:
        k_tile //= 2
    while row_tile > 128 and est(row_tile, k_tile) > _VMEM_BUDGET:
        row_tile //= 2

    n_pad = _round_up(n, row_tile)
    while n_pad % k_tile != 0:      # n_pad is a multiple of 128, so this terminates
        k_tile //= 2
    return row_tile, n_pad, k_tile


def build_folded_adjacency(edge_index, edge_type, edge_weight, n_pad, num_relations):
    """A2[i, r*n_pad + j] = sum of weights of edges j -> i with relation r.

    Built directly at padded shape (no separate pad pass).
    """
    src = edge_index[0]
    dst = edge_index[1]
    adj = jnp.zeros((n_pad, num_relations * n_pad), jnp.float32)
    adj = adj.at[dst, edge_type * n_pad + src].add(edge_weight)
    return adj


def build_dense_adjacency(edge_index, edge_type, edge_weight, num_nodes, num_relations):
    """(R, N, N) adjacency for the pure-JAX reference."""
    src = edge_index[0]
    dst = edge_index[1]
    adj = jnp.zeros((num_relations, num_nodes, num_nodes), jnp.float32)
    adj = adj.at[edge_type, dst, src].add(edge_weight)
    return adj


def _rgcn_layer_kernel(x_ref, h_ref, a_ref, hw_ref, wroot_ref, wskip_ref, bias_ref,
                       out_ref, acc_ref):
    """One RGCNLayerWithSkip row tile.

    Grid = (row_tiles [parallel], k_tiles [arbitrary, reduction over R*n_pad]).
    fp32 accumulation in VMEM scratch; output (bf16 for intermediate layers, fp32 for
    the final layer) is written only on the last reduction step.
    """
    k = pl.program_id(1)

    @pl.when(k == 0)
    def _init():
        acc_ref[...] = (
            jnp.dot(h_ref[...], wroot_ref[...], preferred_element_type=jnp.float32)
            + jnp.dot(x_ref[...], wskip_ref[...], preferred_element_type=jnp.float32)
            + bias_ref[...]
        )

    # Folded relation sum: one long-K matmul slice A2[tile, k_block] @ HW[k_block].
    acc_ref[...] += jnp.dot(a_ref[...], hw_ref[...],
                            preferred_element_type=jnp.float32)

    @pl.when(k == pl.num_programs(1) - 1)
    def _store():
        out_ref[...] = acc_ref[...].astype(out_ref.dtype)


def rgcn_layer_with_skip(x_p, h_p, a2_p, hw_flat, w_root_p, w_skip_p, bias_p,
                         *, row_tile, k_tile, out_dtype):
    """All inputs already padded; bf16 except bias (fp32). Returns padded output."""
    n_pad, d_skip_pad = x_p.shape
    _, d_in_pad = h_p.shape
    d_out_pad = w_root_p.shape[1]
    k_total = a2_p.shape[1]
    assert k_total == hw_flat.shape[0]
    assert n_pad % row_tile == 0 and k_total % k_tile == 0
    n_tiles = n_pad // row_tile
    k_tiles = k_total // k_tile

    grid_spec = pltpu.PrefetchScalarGridSpec(
        num_scalar_prefetch=0,
        grid=(n_tiles, k_tiles),
        in_specs=[
            pl.BlockSpec((row_tile, d_skip_pad), lambda i, k: (i, 0)),   # x row tile
            pl.BlockSpec((row_tile, d_in_pad), lambda i, k: (i, 0)),     # h row tile
            pl.BlockSpec((row_tile, k_tile), lambda i, k: (i, k)),       # folded adjacency
            pl.BlockSpec((k_tile, d_out_pad), lambda i, k: (k, 0)),      # folded HW
            pl.BlockSpec((d_in_pad, d_out_pad), lambda i, k: (0, 0)),    # w_root
            pl.BlockSpec((d_skip_pad, d_out_pad), lambda i, k: (0, 0)),  # w_skip
            pl.BlockSpec((1, d_out_pad), lambda i, k: (0, 0)),           # fused bias
        ],
        out_specs=pl.BlockSpec((row_tile, d_out_pad), lambda i, k: (i, 0)),
        scratch_shapes=[pltpu.VMEM((row_tile, d_out_pad), jnp.float32)],
    )

    return pl.pallas_call(
        _rgcn_layer_kernel,
        out_shape=jax.ShapeDtypeStruct((n_pad, d_out_pad), out_dtype),
        grid_spec=grid_spec,
        compiler_params=pltpu.CompilerParams(
            dimension_semantics=("parallel", "arbitrary"),
            vmem_limit_bytes=32 * 1024 * 1024),
    )(x_p, h_p, a2_p, hw_flat, w_root_p, w_skip_p, bias_p)


def init_wrgcn_params(key, input_dim, dim, num_layers, num_relations):
    params = []
    for l in range(num_layers):
        d_in = input_dim if l == 0 else dim
        key, k1, k2, k3, k4, k5 = jax.random.split(key, 6)
        params.append({
            "w_rel": 0.1 * jax.random.normal(k1, (num_relations, d_in, dim), jnp.float32),
            "w_root": 0.1 * jax.random.normal(k2, (d_in, dim), jnp.float32),
            "b_conv": 0.1 * jax.random.normal(k3, (dim,), jnp.float32),
            "w_skip": 0.1 * jax.random.normal(k4, (input_dim, dim), jnp.float32),
            "b_skip": 0.1 * jax.random.normal(k5, (dim,), jnp.float32),
        })
    return params


def wrgcn_forward(params, x, edge_index, edge_type, edge_weight, num_relations):
    n, input_dim = x.shape
    dim = params[-1]["w_root"].shape[1]
    num_layers = len(params)
    assert num_relations >= 1, "num_relations must be >= 1"

    d_skip_pad = _round_up(input_dim, _LANE)
    d_pad_max = max(
        [d_skip_pad]
        + [_round_up(p["w_root"].shape[0], _LANE) for p in params]
        + [_round_up(p["w_root"].shape[1], _LANE) for p in params])
    row_tile, n_pad, k_tile = _choose_tiles(n, d_pad_max)

    if edge_weight is None:
        edge_weight = jnp.ones((edge_index.shape[1],), jnp.float32)

    # Folded adjacency, built at padded shape, single cast to bf16.
    a2_p = build_folded_adjacency(
        edge_index, edge_type, edge_weight, n_pad, num_relations).astype(jnp.bfloat16)

    x_p = _pad2(x, n_pad, d_skip_pad).astype(jnp.bfloat16)
    h_p = x_p  # layer 0: h == x (padded, bf16)

    out = None
    for li, p in enumerate(params):
        d_in, d_out = p["w_root"].shape
        d_in_pad = _round_up(d_in, _LANE)
        d_out_pad = _round_up(d_out, _LANE)
        assert h_p.shape == (n_pad, d_in_pad)

        w_rel_p = jnp.pad(
            p["w_rel"],
            ((0, 0), (0, d_in_pad - d_in), (0, d_out_pad - d_out))).astype(jnp.bfloat16)
        w_root_p = _pad2(p["w_root"], d_in_pad, d_out_pad).astype(jnp.bfloat16)
        w_skip_p = _pad2(p["w_skip"], d_skip_pad, d_out_pad).astype(jnp.bfloat16)
        bias_p = jnp.pad(p["b_conv"] + p["b_skip"],
                         (0, d_out_pad - d_out)).reshape(1, d_out_pad).astype(jnp.float32)

        # Hoisted per-relation projection HW[r] = H @ W_rel[r], computed once per layer
        # and flattened so the relation sum folds into one long-K matmul in the kernel.
        hw = jnp.einsum('nd,rde->rne', h_p, w_rel_p,
                        preferred_element_type=jnp.float32)
        hw_flat = hw.reshape(num_relations * n_pad, d_out_pad).astype(jnp.bfloat16)

        is_last = (li == num_layers - 1)
        # dropout p=0.0 -> identity
        out = rgcn_layer_with_skip(
            x_p, h_p, a2_p, hw_flat, w_root_p, w_skip_p, bias_p,
            row_tile=row_tile, k_tile=k_tile,
            out_dtype=jnp.float32 if is_last else jnp.bfloat16)
        h_p = out  # intermediate layers emit bf16 directly from the kernel

    return out[:n, :dim]


def wrgcn_reference(params, x, edge_index, edge_type, edge_weight, num_relations):
    """Pure-JAX fp32 reference for verification."""
    n = x.shape[0]
    adj = build_dense_adjacency(edge_index, edge_type, edge_weight, n, num_relations)
    h = x
    for p in params:
        out = h @ p["w_root"] + p["b_conv"] + x @ p["w_skip"] + p["b_skip"]
        for r in range(num_relations):
            out = out + adj[r] @ (h @ p["w_rel"][r])
        h = out
    return h


if __name__ == "__main__":
    # Deterministic example sized to exercise multi-row-tile accumulation
    # (160 nodes -> 2 row tiles of 128) and a multi-step k reduction (3 k blocks).
    num_nodes = 160
    input_dim = 48
    dim = 32
    num_layers = 2
    num_relations = 3
    num_edges = 400

    key = jax.random.PRNGKey(0)
    key, kx, ke_src, ke_dst, ke_type, ke_w, kp = jax.random.split(key, 7)

    x = jax.random.normal(kx, (num_nodes, input_dim), jnp.float32)
    edge_index = jnp.stack([
        jax.random.randint(ke_src, (num_edges,), 0, num_nodes, jnp.int32),
        jax.random.randint(ke_dst, (num_edges,), 0, num_nodes, jnp.int32),
    ])
    edge_type = jax.random.randint(ke_type, (num_edges,), 0, num_relations, jnp.int32)
    edge_weight = jax.random.uniform(ke_w, (num_edges,), jnp.float32)

    params = init_wrgcn_params(kp, input_dim, dim, num_layers, num_relations)

    fwd = jax.jit(functools.partial(wrgcn_forward, num_relations=num_relations))
    out = fwd(params, x, edge_index, edge_type, edge_weight)
    out = jax.block_until_ready(out)

    ref = wrgcn_reference(params, x, edge_index, edge_type, edge_weight, num_relations)
    assert out.shape == (num_nodes, dim)
    # bf16 operand streaming (fp32 accumulation) -> loosened tolerance vs. fp32 reference.
    assert jnp.allclose(out, ref, atol=5e-2, rtol=5e-2), "mismatch vs. pure-JAX reference"

    print("KERNEL_OK")
</pallas_src>

<mosaic_0001>
module attributes {stable_mosaic.version = 11 : i64} {
  func.func private @main(%arg0: i32) attributes {dimension_semantics = [#tpu.dimension_semantics<core_parallel>], iteration_bounds = array<i64: 2>, tpu.core_type = #tpu.core_type<sc_scalar_subcore>, window_params = []} {
    return
  }
}

module attributes {stable_mosaic.version = 11 : i64} {
  func.func private @main(%arg0: i32) attributes {dimension_semantics = [#tpu.dimension_semantics<core_parallel>], iteration_bounds = array<i64: 2>, tpu.core_type = #tpu.core_type<sc_scalar_subcore>, window_params = []} {
    return
  }
}

module attributes {stable_mosaic.version = 11 : i64} {
  func.func @_rgcn_layer_kernel(%arg0: i32, %arg1: i32, %arg2: memref<128x128xbf16, #tpu.memory_space<vmem>>, %arg3: memref<128x128xbf16, #tpu.memory_space<vmem>>, %arg4: memref<128x256xbf16, #tpu.memory_space<vmem>>, %arg5: memref<256x128xbf16, #tpu.memory_space<vmem>>, %arg6: memref<128x128xbf16, #tpu.memory_space<vmem>>, %arg7: memref<128x128xbf16, #tpu.memory_space<vmem>>, %arg8: memref<1x128xf32, #tpu.memory_space<vmem>>, %arg9: memref<128x128xbf16, #tpu.memory_space<vmem>>, %arg10: memref<128x128xf32, #tpu.memory_space<vmem>>) attributes {dimension_semantics = [#tpu.dimension_semantics<parallel>, #tpu.dimension_semantics<arbitrary>], iteration_bounds = array<i64: 2, 3>, scalar_prefetch = 0 : i64, scratch_operands = 1 : i64, tpu.core_type = #tpu.core_type<tc>, window_params = [{transform_indices = @transform_0, window_bounds = array<i64: 128, 128>}, {transform_indices = @transform_1, window_bounds = array<i64: 128, 128>}, {transform_indices = @transform_2, window_bounds = array<i64: 128, 256>}, {transform_indices = @transform_3, window_bounds = array<i64: 256, 128>}, {pipeline_mode = #tpu.pipeline_mode<synchronous>, transform_indices = @transform_4, window_bounds = array<i64: 128, 128>}, {pipeline_mode = #tpu.pipeline_mode<synchronous>, transform_indices = @transform_5, window_bounds = array<i64: 128, 128>}, {pipeline_mode = #tpu.pipeline_mode<synchronous>, transform_indices = @transform_6, window_bounds = array<i64: 1, 128>}, {transform_indices = @transform_7, window_bounds = array<i64: 128, 128>}]} {
    %c0_i32 = arith.constant 0 : i32
    %0 = arith.cmpi eq, %arg1, %c0_i32 : i32
    %1 = arith.extui %0 : i1 to i32
    %c0_i32_0 = arith.constant 0 : i32
    %2 = arith.cmpi ne, %1, %c0_i32_0 : i32
    scf.if %2 {
      %c0_9 = arith.constant 0 : index
      %c0_10 = arith.constant 0 : index
      %12 = vector.load %arg3[%c0_9, %c0_10] : memref<128x128xbf16, #tpu.memory_space<vmem>>, vector<128x128xbf16>
      %c0_11 = arith.constant 0 : index
      %c0_12 = arith.constant 0 : index
      %13 = vector.load %arg6[%c0_11, %c0_12] : memref<128x128xbf16, #tpu.memory_space<vmem>>, vector<128x128xbf16>
      %cst_13 = arith.constant dense<0.000000e+00> : vector<128x128xf32>
      %14 = tpu.matmul %12, %13, %cst_13 {dimension_numbers = #tpu.dot_dimension_numbers<[1], [0], [0], [1], [0, 0, 1, 1], [], []>} : vector<128x128xbf16>, vector<128x128xbf16>, vector<128x128xf32> -> vector<128x128xf32>
      %c0_14 = arith.constant 0 : index
      %c0_15 = arith.constant 0 : index
      %15 = vector.load %arg2[%c0_14, %c0_15] : memref<128x128xbf16, #tpu.memory_space<vmem>>, vector<128x128xbf16>
      %c0_16 = arith.constant 0 : index
      %c0_17 = arith.constant 0 : index
      %16 = vector.load %arg7[%c0_16, %c0_17] : memref<128x128xbf16, #tpu.memory_space<vmem>>, vector<128x128xbf16>
      %cst_18 = arith.constant dense<0.000000e+00> : vector<128x128xf32>
      %17 = tpu.matmul %15, %16, %cst_18 {dimension_numbers = #tpu.dot_dimension_numbers<[1], [0], [0], [1], [0, 0, 1, 1], [], []>} : vector<128x128xbf16>, vector<128x128xbf16>, vector<128x128xf32> -> vector<128x128xf32>
      %18 = arith.addf %14, %17 : vector<128x128xf32>
      %c0_19 = arith.constant 0 : index
      %c0_20 = arith.constant 0 : index
      %19 = vector.load %arg8[%c0_19, %c0_20] : memref<1x128xf32, #tpu.memory_space<vmem>>, vector<1x128xf32>
      %20 = vector.broadcast %19 : vector<1x128xf32> to vector<128x128xf32>
      %21 = arith.addf %18, %20 : vector<128x128xf32>
      %c0_21 = arith.constant 0 : index
      %c0_22 = arith.constant 0 : index
      %22 = vector.load %arg10[%c0_21, %c0_22] : memref<128x128xf32, #tpu.memory_space<vmem>>, vector<128x128xf32>
      tpu.vector_store %arg10[%c0_21, %c0_22], %21 {strides = array<i32>} : memref<128x128xf32, #tpu.memory_space<vmem>>, vector<128x128xf32>,
    } else {
    }
    %c0 = arith.constant 0 : index
    %c0_1 = arith.constant 0 : index
    %3 = vector.load %arg10[%c0, %c0_1] : memref<128x128xf32, #tpu.memory_space<vmem>>, vector<128x128xf32>
    %c0_2 = arith.constant 0 : index
    %c0_3 = arith.constant 0 : index
    %4 = vector.load %arg4[%c0_2, %c0_3] : memref<128x256xbf16, #tpu.memory_space<vmem>>, vector<128x256xbf16>
    %c0_4 = arith.constant 0 : index
    %c0_5 = arith.constant 0 : index
    %5 = vector.load %arg5[%c0_4, %c0_5] : memref<256x128xbf16, #tpu.memory_space<vmem>>, vector<256x128xbf16>
    %cst = arith.constant dense<0.000000e+00> : vector<128x128xf32>
    %6 = tpu.matmul %4, %5, %cst {dimension_numbers = #tpu.dot_dimension_numbers<[1], [0], [0], [1], [0, 0, 1, 1], [], []>} : vector<128x256xbf16>, vector<256x128xbf16>, vector<128x128xf32> -> vector<128x128xf32>
    %7 = arith.addf %3, %6 : vector<128x128xf32>
    %c0_6 = arith.constant 0 : index
    %c0_7 = arith.constant 0 : index
    %8 = vector.load %arg10[%c0_6, %c0_7] : memref<128x128xf32, #tpu.memory_space<vmem>>, vector<128x128xf32>
    tpu.vector_store %arg10[%c0_6, %c0_7], %7 {strides = array<i32>} : memref<128x128xf32, #tpu.memory_space<vmem>>, vector<128x128xf32>,
    %c2_i32 = arith.constant 2 : i32
    %9 = arith.cmpi eq, %arg1, %c2_i32 : i32
    %10 = arith.extui %9 : i1 to i32
    %c0_i32_8 = arith.constant 0 : i32
    %11 = arith.cmpi ne, %10, %c0_i32_8 : i32
    scf.if %11 {
      %c0_9 = arith.constant 0 : index
      %c0_10 = arith.constant 0 : index
      %12 = vector.load %arg10[%c0_9, %c0_10] : memref<128x128xf32, #tpu.memory_space<vmem>>, vector<128x128xf32>
      %13 = arith.truncf %12 : vector<128x128xf32> to vector<128x128xbf16>
      %c0_11 = arith.constant 0 : index
      %c0_12 = arith.constant 0 : index
      %14 = vector.load %arg9[%c0_11, %c0_12] : memref<128x128xbf16, #tpu.memory_space<vmem>>, vector<128x128xbf16>
      tpu.vector_store %arg9[%c0_11, %c0_12], %13 {strides = array<i32>} : memref<128x128xbf16, #tpu.memory_space<vmem>>, vector<128x128xbf16>,
    } else {
    }
    return
  }
  func.func @transform_0(%arg0: i32, %arg1: i32) -> (i32, i32) {
    %c0_i32 = arith.constant 0 : i32
    %c0_i32_0 = arith.constant 0 : i32
    return %arg0, %c0_i32 : i32, i32
  }
  func.func @transform_1(%arg0: i32, %arg1: i32) -> (i32, i32) {
    %c0_i32 = arith.constant 0 : i32
    %c0_i32_0 = arith.constant 0 : i32
    return %arg0, %c0_i32 : i32, i32
  }
  func.func @transform_2(%arg0: i32, %arg1: i32) -> (i32, i32) {
    %c0_i32 = arith.constant 0 : i32
    return %arg0, %arg1 : i32, i32
  }
  func.func @transform_3(%arg0: i32, %arg1: i32) -> (i32, i32) {
    %c0_i32 = arith.constant 0 : i32
    %c0_i32_0 = arith.constant 0 : i32
    return %arg1, %c0_i32 : i32, i32
  }
  func.func @transform_4(%arg0: i32, %arg1: i32) -> (i32, i32) {
    %c0_i32 = arith.constant 0 : i32
    %c0_i32_0 = arith.constant 0 : i32
    %c0_i32_1 = arith.constant 0 : i32
    return %c0_i32, %c0_i32_0 : i32, i32
  }
  func.func @transform_5(%arg0: i32, %arg1: i32) -> (i32, i32) {
    %c0_i32 = arith.constant 0 : i32
    %c0_i32_0 = arith.constant 0 : i32
    %c0_i32_1 = arith.constant 0 : i32
    return %c0_i32, %c0_i32_0 : i32, i32
  }
  func.func @transform_6(%arg0: i32, %arg1: i32) -> (i32, i32) {
    %c0_i32 = arith.constant 0 : i32
    %c0_i32_0 = arith.constant 0 : i32
    %c0_i32_1 = arith.constant 0 : i32
    return %c0_i32, %c0_i32_0 : i32, i32
  }
  func.func @transform_7(%arg0: i32, %arg1: i32) -> (i32, i32) {
    %c0_i32 = arith.constant 0 : i32
    %c0_i32_0 = arith.constant 0 : i32
    return %arg0, %c0_i32 : i32, i32
  }
}

module attributes {stable_mosaic.version = 11 : i64} {
  func.func @_rgcn_layer_kernel(%arg0: i32, %arg1: i32, %arg2: memref<128x128xbf16, #tpu.memory_space<vmem>>, %arg3: memref<128x128xbf16, #tpu.memory_space<vmem>>, %arg4: memref<128x256xbf16, #tpu.memory_space<vmem>>, %arg5: memref<256x128xbf16, #tpu.memory_space<vmem>>, %arg6: memref<128x128xbf16, #tpu.memory_space<vmem>>, %arg7: memref<128x128xbf16, #tpu.memory_space<vmem>>, %arg8: memref<1x128xf32, #tpu.memory_space<vmem>>, %arg9: memref<128x128xf32, #tpu.memory_space<vmem>>, %arg10: memref<128x128xf32, #tpu.memory_space<vmem>>) attributes {dimension_semantics = [#tpu.dimension_semantics<parallel>, #tpu.dimension_semantics<arbitrary>], iteration_bounds = array<i64: 2, 3>, scalar_prefetch = 0 : i64, scratch_operands = 1 : i64, tpu.core_type = #tpu.core_type<tc>, window_params = [{transform_indices = @transform_0, window_bounds = array<i64: 128, 128>}, {transform_indices = @transform_1, window_bounds = array<i64: 128, 128>}, {transform_indices = @transform_2, window_bounds = array<i64: 128, 256>}, {transform_indices = @transform_3, window_bounds = array<i64: 256, 128>}, {pipeline_mode = #tpu.pipeline_mode<synchronous>, transform_indices = @transform_4, window_bounds = array<i64: 128, 128>}, {pipeline_mode = #tpu.pipeline_mode<synchronous>, transform_indices = @transform_5, window_bounds = array<i64: 128, 128>}, {pipeline_mode = #tpu.pipeline_mode<synchronous>, transform_indices = @transform_6, window_bounds = array<i64: 1, 128>}, {transform_indices = @transform_7, window_bounds = array<i64: 128, 128>}]} {
    %c0_i32 = arith.constant 0 : i32
    %0 = arith.cmpi eq, %arg1, %c0_i32 : i32
    %1 = arith.extui %0 : i1 to i32
    %c0_i32_0 = arith.constant 0 : i32
    %2 = arith.cmpi ne, %1, %c0_i32_0 : i32
    scf.if %2 {
      %c0_9 = arith.constant 0 : index
      %c0_10 = arith.constant 0 : index
      %12 = vector.load %arg3[%c0_9, %c0_10] : memref<128x128xbf16, #tpu.memory_space<vmem>>, vector<128x128xbf16>
      %c0_11 = arith.constant 0 : index
      %c0_12 = arith.constant 0 : index
      %13 = vector.load %arg6[%c0_11, %c0_12] : memref<128x128xbf16, #tpu.memory_space<vmem>>, vector<128x128xbf16>
      %cst_13 = arith.constant dense<0.000000e+00> : vector<128x128xf32>
      %14 = tpu.matmul %12, %13, %cst_13 {dimension_numbers = #tpu.dot_dimension_numbers<[1], [0], [0], [1], [0, 0, 1, 1], [], []>} : vector<128x128xbf16>, vector<128x128xbf16>, vector<128x128xf32> -> vector<128x128xf32>
      %c0_14 = arith.constant 0 : index
      %c0_15 = arith.constant 0 : index
      %15 = vector.load %arg2[%c0_14, %c0_15] : memref<128x128xbf16, #tpu.memory_space<vmem>>, vector<128x128xbf16>
      %c0_16 = arith.constant 0 : index
      %c0_17 = arith.constant 0 : index
      %16 = vector.load %arg7[%c0_16, %c0_17] : memref<128x128xbf16, #tpu.memory_space<vmem>>, vector<128x128xbf16>
      %cst_18 = arith.constant dense<0.000000e+00> : vector<128x128xf32>
      %17 = tpu.matmul %15, %16, %cst_18 {dimension_numbers = #tpu.dot_dimension_numbers<[1], [0], [0], [1], [0, 0, 1, 1], [], []>} : vector<128x128xbf16>, vector<128x128xbf16>, vector<128x128xf32> -> vector<128x128xf32>
      %18 = arith.addf %14, %17 : vector<128x128xf32>
      %c0_19 = arith.constant 0 : index
      %c0_20 = arith.constant 0 : index
      %19 = vector.load %arg8[%c0_19, %c0_20] : memref<1x128xf32, #tpu.memory_space<vmem>>, vector<1x128xf32>
      %20 = vector.broadcast %19 : vector<1x128xf32> to vector<128x128xf32>
      %21 = arith.addf %18, %20 : vector<128x128xf32>
      %c0_21 = arith.constant 0 : index
      %c0_22 = arith.constant 0 : index
      %22 = vector.load %arg10[%c0_21, %c0_22] : memref<128x128xf32, #tpu.memory_space<vmem>>, vector<128x128xf32>
      tpu.vector_store %arg10[%c0_21, %c0_22], %21 {strides = array<i32>} : memref<128x128xf32, #tpu.memory_space<vmem>>, vector<128x128xf32>,
    } else {
    }
    %c0 = arith.constant 0 : index
    %c0_1 = arith.constant 0 : index
    %3 = vector.load %arg10[%c0, %c0_1] : memref<128x128xf32, #tpu.memory_space<vmem>>, vector<128x128xf32>
    %c0_2 = arith.constant 0 : index
    %c0_3 = arith.constant 0 : index
    %4 = vector.load %arg4[%c0_2, %c0_3] : memref<128x256xbf16, #tpu.memory_space<vmem>>, vector<128x256xbf16>
    %c0_4 = arith.constant 0 : index
    %c0_5 = arith.constant 0 : index
    %5 = vector.load %arg5[%c0_4, %c0_5] : memref<256x128xbf16, #tpu.memory_space<vmem>>, vector<256x128xbf16>
    %cst = arith.constant dense<0.000000e+00> : vector<128x128xf32>
    %6 = tpu.matmul %4, %5, %cst {dimension_numbers = #tpu.dot_dimension_numbers<[1], [0], [0], [1], [0, 0, 1, 1], [], []>} : vector<128x256xbf16>, vector<256x128xbf16>, vector<128x128xf32> -> vector<128x128xf32>
    %7 = arith.addf %3, %6 : vector<128x128xf32>
    %c0_6 = arith.constant 0 : index
    %c0_7 = arith.constant 0 : index
    %8 = vector.load %arg10[%c0_6, %c0_7] : memref<128x128xf32, #tpu.memory_space<vmem>>, vector<128x128xf32>
    tpu.vector_store %arg10[%c0_6, %c0_7], %7 {strides = array<i32>} : memref<128x128xf32, #tpu.memory_space<vmem>>, vector<128x128xf32>,
    %c2_i32 = arith.constant 2 : i32
    %9 = arith.cmpi eq, %arg1, %c2_i32 : i32
    %10 = arith.extui %9 : i1 to i32
    %c0_i32_8 = arith.constant 0 : i32
    %11 = arith.cmpi ne, %10, %c0_i32_8 : i32
    scf.if %11 {
      %c0_9 = arith.constant 0 : index
      %c0_10 = arith.constant 0 : index
      %12 = vector.load %arg10[%c0_9, %c0_10] : memref<128x128xf32, #tpu.memory_space<vmem>>, vector<128x128xf32>
      %c0_11 = arith.constant 0 : index
      %c0_12 = arith.constant 0 : index
      %13 = vector.load %arg9[%c0_11, %c0_12] : memref<128x128xf32, #tpu.memory_space<vmem>>, vector<128x128xf32>
      tpu.vector_store %arg9[%c0_11, %c0_12], %12 {strides = array<i32>} : memref<128x128xf32, #tpu.memory_space<vmem>>, vector<128x128xf32>,
    } else {
    }
    return
  }
  func.func @transform_0(%arg0: i32, %arg1: i32) -> (i32, i32) {
    %c0_i32 = arith.constant 0 : i32
    %c0_i32_0 = arith.constant 0 : i32
    return %arg0, %c0_i32 : i32, i32
  }
  func.func @transform_1(%arg0: i32, %arg1: i32) -> (i32, i32) {
    %c0_i32 = arith.constant 0 : i32
    %c0_i32_0 = arith.constant 0 : i32
    return %arg0, %c0_i32 : i32, i32
  }
  func.func @transform_2(%arg0: i32, %arg1: i32) -> (i32, i32) {
    %c0_i32 = arith.constant 0 : i32
    return %arg0, %arg1 : i32, i32
  }
  func.func @transform_3(%arg0: i32, %arg1: i32) -> (i32, i32) {
    %c0_i32 = arith.constant 0 : i32
    %c0_i32_0 = arith.constant 0 : i32
    return %arg1, %c0_i32 : i32, i32
  }
  func.func @transform_4(%arg0: i32, %arg1: i32) -> (i32, i32) {
    %c0_i32 = arith.constant 0 : i32
    %c0_i32_0 = arith.constant 0 : i32
    %c0_i32_1 = arith.constant 0 : i32
    return %c0_i32, %c0_i32_0 : i32, i32
  }
  func.func @transform_5(%arg0: i32, %arg1: i32) -> (i32, i32) {
    %c0_i32 = arith.constant 0 : i32
    %c0_i32_0 = arith.constant 0 : i32
    %c0_i32_1 = arith.constant 0 : i32
    return %c0_i32, %c0_i32_0 : i32, i32
  }
  func.func @transform_6(%arg0: i32, %arg1: i32) -> (i32, i32) {
    %c0_i32 = arith.constant 0 : i32
    %c0_i32_0 = arith.constant 0 : i32
    %c0_i32_1 = arith.constant 0 : i32
    return %c0_i32, %c0_i32_0 : i32, i32
  }
  func.func @transform_7(%arg0: i32, %arg1: i32) -> (i32, i32) {
    %c0_i32 = arith.constant 0 : i32
    %c0_i32_0 = arith.constant 0 : i32
    return %arg0, %c0_i32 : i32, i32
  }
}

</mosaic_0001>

<bundles_post_ra>
// kernel: wrgcn_forward.2
= control target key start
LH: loop header
LB: loop body
LE: loop exit
PB: predicated region body
PF: predicated region fallthrough
CT: control target
= control target key end

     0   :  { %s2358_s0 = inlined_call_operand.vmem [shape: bf16[256,128], index: 0, kind: input, shape index: {}, may-alias: {0,1}]   ;;  %s2359_s1 = inlined_call_operand.vmem [shape: bf16[256,128], index: 1, kind: input, shape index: {}, may-alias: {0,1}]   ;;  %s2360_s2 = inlined_call_operand.vmem [shape: bf16[256,768], index: 2, kind: input, shape index: {}]   ;;  %s2361_s3 = inlined_call_operand.vmem [shape: bf16[768,128], index: 3, kind: input, shape index: {}]   ;;  %s2362_s4 = inlined_call_operand.vmem [shape: bf16[128,128], index: 4, kind: input, shape index: {}]   ;;  %s2363_s5 = inlined_call_operand.vmem [shape: bf16[128,128], index: 5, kind: input, shape index: {}]   ;;  %s2364_s6 = inlined_call_operand.vmem [shape: f32[1,128], index: 6, kind: input, shape index: {}]   ;;  %s2365_s7 = inlined_call_operand.vmem [shape: bf16[256,128], index: 7, kind: output, shape index: {}]  }
   0x1   :  { %2366 = sst [smem:[#allocation4_spill]] %s2358_s0 }
   0x2   :  { %2367 = sst [smem:[#allocation5_spill]] %s2360_s2 }
   0x3   :  { %s2105_s24 = smov 0   ;;  %s2107_s25 = smov 0  }
   0x4   :  { %s2109_s26 = smov 0   ;;  %s2111_s27 = smov 0  }
   0x5   :  { %s2113_s28 = smov 0   ;;  %s2115_s29 = smov 0  }
   0x6   :  { %s2117_s30 = smov 0  }
   0x7 LB: > { %s26_s8 = sadd.s32 1, %s2055_s28  ;;  %s29_s9 = sadd.s32 1, %s2059_s29  ;;  %s2063_s30 = sphi %s2117_s30, %s17_s30   ;;  %s2059_s29 = sphi %s2115_s29, %s2375_s29   ;;  %s2055_s28 = sphi %s2113_s28, %s2374_s28   ;;  %s2051_s27 = sphi %s2111_s27, %s2373_s27   ;;  %s2047_s26 = sphi %s2109_s26, %s2372_s26   ;;  %s2043_s25 = sphi %s2107_s25, %s2371_s25   ;;  %s2039_s24 = sphi %s2105_s24, %s2370_s24  }
   0x8   : > { %p27_p0 = scmp.ge.s32.totalorder %s26_s8, 3  ;;  %p97_p1 = scmp.ne.s32.totalorder %s2043_s25, %s2039_s24 }
   0x9   : > { %p98_p2 = scmp.eq.s32.totalorder %s2063_s30, 0  ;;  %s90_s13 = sadd.s32 1, %s2043_s25 }
   0xa   : > { %s2377_s8 = smov (%p27_p0, %s26_s8), 0  ;;  %s2379_s9 = smov (!%p27_p0, %s29_s9), %s2059_s29 }
   0xb   : > { %p99_p3 = por %p98_p2, %p97_p1  ;;  %p31_p4 = scmp.ge.s32.totalorder %s2379_s9, 2 }
   0xc   : > { %s86_s10 = ssub.s32 %s2055_s28, %s2377_s8  ;;  %p1540_p6 = scmp.ge.s32.totalorder %s2063_s30, 6 }
   0xd   : > { %s2381_s9 = smov (%p31_p4, %s2379_s9), 0 }
   0xe   : > { %s85_s11 = ssub.s32 %s2059_s29, %s2381_s9  ;;  %247 = sbr.rel (%p1540_p6) target bundleno = 37 (0x25), region = 28 }
   0xf   : > { %s87_s12 = sor.u32 %s86_s10, %s85_s11 }
  0x10   : > { %p88_p5 = scmp.eq.s32.totalorder %s87_s12, 0 }
  0x12   : > { %s2156_s14 = scalar_select %p88_p5, %s2043_s25, %s90_s13  }
  0x13   : > { %268 = sbr.rel (!%p99_p3) target bundleno = 37 (0x25), region = 40  ;;  %s270_s15 = sand.u32 (%p99_p3), 1, %s2043_s25  }
  0x14   : > { %s1543_s16 = sshll.u32 (%p99_p3), %s2055_s28, 1  ;;  %s1541_s17 = sshll.u32 (%p99_p3), %s270_s15, 7 }
  0x15   : > { %s1880_s18 = smul.u32 (%p99_p3), 96, %s2059_s29  ;;  %s2368_s2 = sld [smem:[#allocation5_spill]] (%p99_p3) }
  0x16   : > { %s272_s10 = scalar_lea.vmem (%p99_p3), [#allocation3], %s1541_s17 }
  0x17   : > { %s276_s19 = sadd.s32 (%p99_p3), %s1880_s18, %s1543_s16 }
  0x18   : > { %s1545_s20 = sshll.u32 %s276_s19, 2 }
  0x1b   : > { %s2165_s23 = scalar_lea.vmem %s2368_s2, %s1545_s20 }
  0x1c   : > { %v337_v0 = vld [vmem:[%s2165_s23] sm:$0xff]  ;;  %v339_v1 = vld [vmem:[%s2165_s23 + $0x18] sm:$0xff]  ;;  %v341_v2 = vld [vmem:[%s2165_s23 + $0x30] sm:$0xff] }
  0x1d   : > { %338 = vst [vmem:[%s272_s10] sm:$0xff] %v337_v0  ;;  %340 = vst [vmem:[%s272_s10 + $0x8] sm:$0xff] %v339_v1  ;;  %v343_v3 = vld [vmem:[%s2165_s23 + $0x48] sm:$0xff]  ;;  %v345_v4 = vld [vmem:[%s2165_s23 + $0x60] sm:$0xff] }
  0x1e   : > { %342 = vst [vmem:[%s272_s10 + $0x10] sm:$0xff] %v341_v2  ;;  %v347_v5 = vld [vmem:[%s2165_s23 + $0x78] sm:$0xff]  ;;  %344 = vst [vmem:[%s272_s10 + $0x18] sm:$0xff] %v343_v3  ;;  %v349_v6 = vld [vmem:[%s2165_s23 + $0x90] sm:$0xff] }
  0x1f   : > { %346 = vst [vmem:[%s272_s10 + $0x20] sm:$0xff] %v345_v4  ;;  %348 = vst [vmem:[%s272_s10 + $0x28] sm:$0xff] %v347_v5  ;;  %v351_v7 = vld [vmem:[%s2165_s23 + $0xa8] sm:$0xff]  ;;  %v353_v8 = vld [vmem:[%s2165_s23 + $0xc0] sm:$0xff] }
  0x20   : > { %350 = vst [vmem:[%s272_s10 + $0x30] sm:$0xff] %v349_v6  ;;  %352 = vst [vmem:[%s272_s10 + $0x38] sm:$0xff] %v351_v7  ;;  %v355_v9 = vld [vmem:[%s2165_s23 + $0xd8] sm:$0xff]  ;;  %v357_v10 = vld [vmem:[%s2165_s23 + $0xf0] sm:$0xff] }
  0x21   : > { %354 = vst [vmem:[%s272_s10 + $0x40] sm:$0xff] %v353_v8  ;;  %v359_v11 = vld [vmem:[%s2165_s23 + $0x108] sm:$0xff]  ;;  %356 = vst [vmem:[%s272_s10 + $0x48] sm:$0xff] %v355_v9  ;;  %v361_v12 = vld [vmem:[%s2165_s23 + $0x120] sm:$0xff] }
  0x22   : > { %358 = vst [vmem:[%s272_s10 + $0x50] sm:$0xff] %v357_v10  ;;  %360 = vst [vmem:[%s272_s10 + $0x58] sm:$0xff] %v359_v11  ;;  %v363_v13 = vld [vmem:[%s2165_s23 + $0x138] sm:$0xff]  ;;  %v365_v14 = vld [vmem:[%s2165_s23 + $0x150] sm:$0xff] }
  0x23   : > { %362 = vst [vmem:[%s272_s10 + $0x60] sm:$0xff] %v361_v12  ;;  %364 = vst [vmem:[%s272_s10 + $0x68] sm:$0xff] %v363_v13  ;;  %v367_v15 = vld [vmem:[%s2165_s23 + $0x168] sm:$0xff] }
  0x24   : > { %366 = vst [vmem:[%s272_s10 + $0x70] sm:$0xff] %v365_v14  ;;  %368 = vst [vmem:[%s272_s10 + $0x78] sm:$0xff] %v367_v15 }
  0x25 PF: > { %p1546_p7 = scmp.ge.s32.totalorder %s2063_s30, 1  ;;  %p382_p8 = scmp.lt.s32.totalorder %s2063_s30, 7 }
  0x27   : > { %p383_p9 = pnand %p1546_p7, %p382_p8 }
  0x28   : > { %s389_s11 = sand.u32 (!%p383_p9), 1, %s2039_s24   ;;  %s1548_s12 = sshll.u32 (!%p383_p9), %s2051_s27, 4 }
  0x29   : > { %386 = sbr.rel (%p383_p9) target bundleno = 589 (0x24d), region = 82  ;;  %s1547_s13 = sshll.u32 (!%p383_p9), %s389_s11, 7 }
  0x2a   : > { %p436_p10 = scmp.lt.s32.totalorder (!%p383_p9), %s1548_s12, 31  ;;  %s1552_s15 = sshll.u32 (!%p383_p9), %s2047_s26, 5 }
  0x2b   : > { %p450_p11 = scmp.lt.s32.totalorder (!%p383_p9), %s1552_s15, 95  ;;  %s2369_s0 = sld [smem:[#allocation4_spill]] (!%p383_p9) }
  0x2c   : > { %s2208_s17 = scalar_lea.vmem (!%p383_p9), [#allocation3], %s1547_s13  ;;  %p1556_p12 = scmp.ne.s32.totalorder (!%p383_p9), %s2047_s26, 0 }
  0x2e   : > { %s2383_s12 = smov (!%p436_p10, %s1548_s12), 31  ;;  %s2385_s15 = smov (!%p450_p11, %s1552_s15), 95 }
  0x2f   : > { %s1549_s16 = sshll.u32 %s2383_s12, 2  ;;  %s1553_s10 = sshll.u32 %s2385_s15, 2 }
  0x30   : > { %s2196_s22 = scalar_lea.vmem %s2359_s1, %s1549_s16  ;;  %s2201_s27 = scalar_lea.vmem %s2365_s7, %s1549_s16 }
  0x31   : > { %s2191_s19 = scalar_lea.vmem %s2369_s0, %s1549_s16  ;;  %s2206_s12 = scalar_lea.vmem %s2361_s3, %s1553_s10 }
  0x32   : > { %465 = sbr.rel (%p1556_p12) target bundleno = 317 (0x13d), region = 90 }
  0x37   : > { %v1937_v16 = vld [vmem:[%s2363_s5 + $0x38] sm:$0xff]   ;;  %v1939_v18 = vld [vmem:[%s2363_s5 + $0x30] sm:$0xff]   ;;  %v1941_v20 = vld [vmem:[%s2363_s5 + $0x28] sm:$0xff]  }
  0x38   : > { %v1938_v17 = vld [vmem:[%s2362_s4 + $0x38] sm:$0xff]   ;;  %1800 = vmatprep.subr.bf16.mxu0 %v1937_v16  ;;  %v1940_v19 = vld [vmem:[%s2362_s4 + $0x30] sm:$0xff]   ;;  %v1942_v21 = vld [vmem:[%s2362_s4 + $0x28] sm:$0xff]  }
  0x39   : > { %1832 = vmatprep.subr.bf16.mxu1 %v1938_v17  ;;  %1801 = vmatpush3.bf16.msra.mxu0 %v1937_v16  ;;  %v1943_v22 = vld [vmem:[%s2363_s5 + $0x20] sm:$0xff]   ;;  %v1945_v24 = vld [vmem:[%s2363_s5 + $0x18] sm:$0xff]   ;;  %v1947_v26 = vld [vmem:[%s2363_s5 + $0x10] sm:$0xff]  }
  0x3a   : > { %1833 = vmatpush3.bf16.msra.mxu1 %v1938_v17  ;;  %1802 = vmatprep.subr.bf16.mxu0 %v1939_v18  ;;  %v1944_v23 = vld [vmem:[%s2362_s4 + $0x20] sm:$0xff]   ;;  %v1946_v25 = vld [vmem:[%s2362_s4 + $0x18] sm:$0xff]   ;;  %v1948_v27 = vld [vmem:[%s2362_s4 + $0x10] sm:$0xff]  }
  0x3b   : > { %1834 = vmatprep.subr.bf16.mxu1 %v1940_v19  ;;  %v1953_v28 = vld [vmem:[%s2191_s19] sm:$0xff]   ;;  %v1949_v30 = vld [vmem:[%s2363_s5 + $0x8] sm:$0xff]   ;;  %v1957_v36 = vld [vmem:[%s2191_s19 + $0x10] sm:$0xff]  }
  0x3c   : > { %v1954_v29 = vld [vmem:[%s2196_s22] sm:$0xff]   ;;  %1816 = vmatprep.mubr.bf16.mxu0 %v1953_v28  ;;  %v1950_v31 = vld [vmem:[%s2362_s4 + $0x8] sm:$0xff]   ;;  %v1958_v37 = vld [vmem:[%s2196_s22 + $0x10] sm:$0xff]  }
  0x3d   : > { %1803 = vmatpush3.bf16.msra.mxu0 %v1939_v18  ;;  %1848 = vmatprep.mubr.bf16.mxu1 %v1954_v29  ;;  %v1951_v32 = vld [vmem:[%s2363_s5] sm:$0xff]   ;;  %v1955_v34 = vld [vmem:[%s2191_s19 + $0x8] sm:$0xff]   ;;  %v1959_v38 = vld [vmem:[%s2191_s19 + $0x18] sm:$0xff]  }
  0x3e   : > { %1835 = vmatpush3.bf16.msra.mxu1 %v1940_v19  ;;  %1804 = vmatprep.subr.bf16.mxu0 %v1941_v20  ;;  %v1952_v33 = vld [vmem:[%s2362_s4] sm:$0xff]   ;;  %v1956_v35 = vld [vmem:[%s2196_s22 + $0x8] sm:$0xff]   ;;  %v1960_v39 = vld [vmem:[%s2196_s22 + $0x18] sm:$0xff]  }
  0x3f   : > { %1836 = vmatprep.subr.bf16.mxu1 %v1942_v21  ;;  %v1961_v40 = vld [vmem:[%s2191_s19 + $0x20] sm:$0xff]   ;;  %v1963_v42 = vld [vmem:[%s2191_s19 + $0x28] sm:$0xff]   ;;  %v1965_v44 = vld [vmem:[%s2191_s19 + $0x30] sm:$0xff]  }
  0x40   : > { %v1962_v41 = vld [vmem:[%s2196_s22 + $0x20] sm:$0xff]   ;;  %v1964_v43 = vld [vmem:[%s2196_s22 + $0x28] sm:$0xff]   ;;  %v1966_v45 = vld [vmem:[%s2196_s22 + $0x30] sm:$0xff]  }
  0x41   : > { %1805 = vmatpush3.bf16.msra.mxu0 %v1941_v20  ;;  %v1967_v46 = vld [vmem:[%s2191_s19 + $0x38] sm:$0xff]   ;;  %v2278_v50 = vld [vmem:[%s2364_s6] ss:$0 sm:$0xff] }
  0x42   : > { %1837 = vmatpush3.bf16.msra.mxu1 %v1942_v21  ;;  %1806 = vmatprep.subr.bf16.mxu0 %v1943_v22  ;;  %v1968_v47 = vld [vmem:[%s2196_s22 + $0x38] sm:$0xff]  }
  0x43   : > { %1838 = vmatprep.subr.bf16.mxu1 %v1944_v23 }
  0x45   : > { %1807 = vmatpush3.bf16.msra.mxu0 %v1943_v22 }
  0x46   : > { %1839 = vmatpush3.bf16.msra.mxu1 %v1944_v23  ;;  %1808 = vmatprep.subr.bf16.mxu0 %v1945_v24 }
  0x47   : > { %1840 = vmatprep.subr.bf16.mxu1 %v1946_v25 }
  0x49   : > { %1809 = vmatpush3.bf16.msra.mxu0 %v1945_v24 }
  0x4a   : > { %1841 = vmatpush3.bf16.msra.mxu1 %v1946_v25  ;;  %1810 = vmatprep.subr.bf16.mxu0 %v1947_v26 }
  0x4b   : > { %1842 = vmatprep.subr.bf16.mxu1 %v1948_v27 }
  0x4d   : > { %1811 = vmatpush3.bf16.msra.mxu0 %v1947_v26 }
  0x4e   : > { %1843 = vmatpush3.bf16.msra.mxu1 %v1948_v27  ;;  %1812 = vmatprep.subr.bf16.mxu0 %v1949_v30 }
  0x4f   : > { %1844 = vmatprep.subr.bf16.mxu1 %v1950_v31 }
  0x51   : > { %1813 = vmatpush3.bf16.msra.mxu0 %v1949_v30 }
  0x52   : > { %1845 = vmatpush3.bf16.msra.mxu1 %v1950_v31  ;;  %1814 = vmatprep.subr.bf16.mxu0 %v1951_v32 }
  0x53   : > { %1846 = vmatprep.subr.bf16.mxu1 %v1952_v33 }
  0x55   : > { %1815 = vmatpush3.bf16.msra.mxu0 %v1951_v32 }
  0x56   : > { %1847 = vmatpush3.bf16.msra.mxu1 %v1952_v33 }
  0x58   : > { %1817 = vmatmul.mubr.bf16.vlgmr.msra.gmra.mxu0 %v1955_v34 }
  0x59   : > { %1849 = vmatmul.mubr.bf16.vlgmr.msra.gmra.mxu1 %v1956_v35  ;;  %1820 = vmatprep.mubr.bf16.mxu0 %v1957_v36 }
  0x5a   : > { %1852 = vmatprep.mubr.bf16.mxu1 %v1958_v37 }
  0x60   : > { %1821 = vmatmul.mubr.bf16.gmra.mxu0 %v1959_v38 }
  0x61   : > { %1853 = vmatmul.mubr.bf16.gmra.mxu1 %v1960_v39  ;;  %1824 = vmatprep.mubr.bf16.mxu0 %v1961_v40 }
  0x62   : > { %1856 = vmatprep.mubr.bf16.mxu1 %v1962_v41 }
  0x68   : > { %1825 = vmatmul.mubr.bf16.gmra.mxu0 %v1963_v42 }
  0x69   : > { %1857 = vmatmul.mubr.bf16.gmra.mxu1 %v1964_v43  ;;  %1828 = vmatprep.mubr.bf16.mxu0 %v1965_v44 }
  0x6a   : > { %1860 = vmatprep.mubr.bf16.mxu1 %v1966_v45 }
  0x70   : > { %1829 = vmatmul.mubr.bf16.gmra.mxu0 %v1967_v46 }
  0x71   : > { %1861 = vmatmul.mubr.bf16.gmra.mxu1 %v1968_v47 }
 0x118   : > { %v1818_v48 = vpop.f32.mrf.mxu0 }
 0x119   : > { %v1850_v49 = vpop.f32.mrf.mxu1 }
 0x11a   : > { %v862_v51 = vadd.f32 %v1850_v49, %v1818_v48  ;;  %v660_v52 = vpop.f32.mrf.mxu0 }
 0x11b   : > { %v853_v53 = vpop.f32.mrf.mxu1 }
 0x11c   : > { %v925_v54 = vadd.f32 %v2278_v50, %v862_v51  ;;  %v854_v55 = vadd.f32 %v853_v53, %v660_v52  ;;  %v1819_v56 = vpop.f32.mrf.mxu0 }
 0x11d   : > { %v1851_v57 = vpop.f32.mrf.mxu1 }
 0x11e   : > { %941 = vst [vmem:[#allocation2 + $0x58] sm:$0xff] %v925_v54  ;;  %v923_v58 = vadd.f32 %v2278_v50, %v854_v55  ;;  %v865_v59 = vadd.f32 %v1851_v57, %v1819_v56  ;;  %v663_v60 = vpop.f32.mrf.mxu0 }
 0x11f   : > { %v856_v61 = vpop.f32.mrf.mxu1 }
 0x120   : > { %939 = vst [vmem:[#allocation2 + $0x30] sm:$0xff] %v923_v58  ;;  %v926_v62 = vadd.f32 %v2278_v50, %v865_v59  ;;  %v857_v63 = vadd.f32 %v856_v61, %v663_v60  ;;  %v1822_v0 = vpop.f32.mrf.mxu0 }
 0x121   : > { %v1854_v1 = vpop.f32.mrf.mxu1 }
 0x122   : > { %942 = vst [vmem:[#allocation2 + $0x18] sm:$0xff] %v926_v62  ;;  %v924_v2 = vadd.f32 %v2278_v50, %v857_v63  ;;  %v878_v3 = vadd.f32 %v1854_v1, %v1822_v0  ;;  %v676_v4 = vpop.f32.mrf.mxu0 }
 0x123   : > { %v869_v5 = vpop.f32.mrf.mxu1 }
 0x124   : > { %940 = vst [vmem:[#allocation2] sm:$0xff] %v924_v2  ;;  %v929_v6 = vadd.f32 %v2278_v50, %v878_v3  ;;  %v870_v7 = vadd.f32 %v869_v5, %v676_v4  ;;  %v1823_v8 = vpop.f32.mrf.mxu0 }
 0x125   : > { %v1855_v9 = vpop.f32.mrf.mxu1 }
 0x126   : > { %945 = vst [vmem:[#allocation2 + $0x8] sm:$0xff] %v929_v6  ;;  %v927_v10 = vadd.f32 %v2278_v50, %v870_v7  ;;  %v881_v11 = vadd.f32 %v1855_v9, %v1823_v8  ;;  %v679_v12 = vpop.f32.mrf.mxu0 }
 0x127   : > { %v872_v13 = vpop.f32.mrf.mxu1 }
 0x128   : > { %943 = vst [vmem:[#allocation2 + $0x50] sm:$0xff] %v927_v10  ;;  %v930_v14 = vadd.f32 %v2278_v50, %v881_v11  ;;  %v873_v15 = vadd.f32 %v872_v13, %v679_v12  ;;  %v1826_v16 = vpop.f32.mrf.mxu0 }
 0x129   : > { %v1858_v17 = vpop.f32.mrf.mxu1 }
 0x12a   : > { %946 = vst [vmem:[#allocation2 + $0x48] sm:$0xff] %v930_v14  ;;  %v928_v18 = vadd.f32 %v2278_v50, %v873_v15  ;;  %v894_v19 = vadd.f32 %v1858_v17, %v1826_v16  ;;  %v692_v20 = vpop.f32.mrf.mxu0 }
 0x12b   : > { %v885_v21 = vpop.f32.mrf.mxu1 }
 0x12c   : > { %944 = vst [vmem:[#allocation2 + $0x68] sm:$0xff] %v928_v18  ;;  %v933_v22 = vadd.f32 %v2278_v50, %v894_v19  ;;  %v886_v23 = vadd.f32 %v885_v21, %v692_v20  ;;  %v1827_v24 = vpop.f32.mrf.mxu0 }
 0x12d   : > { %v1859_v25 = vpop.f32.mrf.mxu1 }
 0x12e   : > { %949 = vst [vmem:[#allocation2 + $0x10] sm:$0xff] %v933_v22  ;;  %v931_v26 = vadd.f32 %v2278_v50, %v886_v23  ;;  %v897_v27 = vadd.f32 %v1859_v25, %v1827_v24  ;;  %v695_v28 = vpop.f32.mrf.mxu0 }
 0x12f   : > { %v888_v29 = vpop.f32.mrf.mxu1 }
 0x130   : > { %947 = vst [vmem:[#allocation2 + $0x40] sm:$0xff] %v931_v26  ;;  %v934_v30 = vadd.f32 %v2278_v50, %v897_v27  ;;  %v889_v31 = vadd.f32 %v888_v29, %v695_v28  ;;  %v1830_v32 = vpop.f32.mrf.mxu0 }
 0x131   : > { %v1862_v33 = vpop.f32.mrf.mxu1 }
 0x132   : > { %950 = vst [vmem:[#allocation2 + $0x38] sm:$0xff] %v934_v30  ;;  %v932_v34 = vadd.f32 %v2278_v50, %v889_v31  ;;  %v910_v35 = vadd.f32 %v1862_v33, %v1830_v32  ;;  %v708_v36 = vpop.f32.mrf.mxu0 }
 0x133   : > { %v901_v37 = vpop.f32.mrf.mxu1 }
 0x134   : > { %948 = vst [vmem:[#allocation2 + $0x20] sm:$0xff] %v932_v34  ;;  %v937_v38 = vadd.f32 %v2278_v50, %v910_v35  ;;  %v902_v39 = vadd.f32 %v901_v37, %v708_v36  ;;  %v1831_v40 = vpop.f32.mrf.mxu0 }
 0x135   : > { %v1863_v41 = vpop.f32.mrf.mxu1 }
 0x136   : > { %953 = vst [vmem:[#allocation2 + $0x78] sm:$0xff] %v937_v38  ;;  %v935_v42 = vadd.f32 %v2278_v50, %v902_v39  ;;  %v913_v43 = vadd.f32 %v1863_v41, %v1831_v40  ;;  %v711_v44 = vpop.f32.mrf.mxu0 }
 0x137   : > { %v904_v45 = vpop.f32.mrf.mxu1 }
 0x138   : > { %951 = vst [vmem:[#allocation2 + $0x60] sm:$0xff] %v935_v42  ;;  %v938_v46 = vadd.f32 %v2278_v50, %v913_v43  ;;  %v905_v47 = vadd.f32 %v904_v45, %v711_v44 }
 0x13a   : > { %954 = vst [vmem:[#allocation2 + $0x28] sm:$0xff] %v938_v46  ;;  %v936_v48 = vadd.f32 %v2278_v50, %v905_v47 }
 0x13c   : > { %952 = vst [vmem:[#allocation2 + $0x70] sm:$0xff] %v936_v48 }
 0x13d PF: > { %v1969_v49 = vld [vmem:[%s2206_s12 + $0x78] sm:$0xff]   ;;  %v1971_v52 = vld [vmem:[%s2206_s12 + $0x70] sm:$0xff]   ;;  %v1973_v50 = vld [vmem:[%s2206_s12 + $0x68] sm:$0xff]   ;;  %p1622_p13 = scmp.ne.s32.totalorder %s2047_s26, 2 }
 0x13e   : > { %v1970_v51 = vld [vmem:[%s2206_s12 + $0x38] sm:$0xff]   ;;  %1736 = vmatprep.subr.bf16.mxu0 %v1969_v49  ;;  %1864 = vmatprep.subr.bf16.mxu1 %v1969_v49  ;;  %v1972_v53 = vld [vmem:[%s2206_s12 + $0x30] sm:$0xff]   ;;  %v1974_v54 = vld [vmem:[%s2206_s12 + $0x28] sm:$0xff]  }
 0x13f   : > { %1737 = vmatpush3.bf16.msra.mxu0 %v1970_v51  ;;  %1872 = vmatpush3.bf16.msra.mxu1 %v1970_v51  ;;  %v1975_v55 = vld [vmem:[%s2206_s12 + $0x60] sm:$0xff]   ;;  %v1977_v57 = vld [vmem:[%s2206_s12 + $0x58] sm:$0xff]   ;;  %v1979_v59 = vld [vmem:[%s2206_s12 + $0x50] sm:$0xff]  }
 0x140   : > { %1738 = vmatprep.subr.bf16.mxu0 %v1971_v52  ;;  %1865 = vmatprep.subr.bf16.mxu1 %v1971_v52  ;;  %v1976_v56 = vld [vmem:[%s2206_s12 + $0x20] sm:$0xff]   ;;  %v1978_v58 = vld [vmem:[%s2206_s12 + $0x18] sm:$0xff]   ;;  %v1980_v62 = vld [vmem:[%s2206_s12 + $0x10] sm:$0xff]  }
 0x141   : > { %v1987_v60 = vld [vmem:[%s2208_s17 + $0x4] ss:$8 sps:$4 sm:$0xff]   ;;  %v1985_v3 = vld [vmem:[%s2208_s17] ss:$8 sps:$4 sm:$0xff]   ;;  %v1991_v5 = vld [vmem:[%s2208_s17 + $0x14] ss:$8 sps:$4 sm:$0xff]  }
 0x142   : > { %v1990_v61 = vld [vmem:[%s2208_s17 + $0x44] ss:$8 sps:$4 sm:$0xff]   ;;  %1227 = vmatprep.mubr.bf16.mxu0 %v1987_v60  ;;  %v1988_v4 = vld [vmem:[%s2208_s17 + $0x40] ss:$8 sps:$4 sm:$0xff]   ;;  %v1993_v6 = vld [vmem:[%s2208_s17 + $0x54] ss:$8 sps:$4 sm:$0xff]  }
 0x143   : > { %1739 = vmatpush3.bf16.msra.mxu0 %v1972_v53  ;;  %1873 = vmatpush3.bf16.msra.mxu1 %v1972_v53  ;;  %v1981_v63 = vld [vmem:[%s2206_s12 + $0x48] sm:$0xff]   ;;  %v1983_v1 = vld [vmem:[%s2206_s12 + $0x40] sm:$0xff]   ;;  %v1995_v7 = vld [vmem:[%s2208_s17 + $0x10] ss:$8 sps:$4 sm:$0xff]  }
 0x144   : > { %1740 = vmatprep.subr.bf16.mxu0 %v1973_v50  ;;  %1866 = vmatprep.subr.bf16.mxu1 %v1973_v50  ;;  %v1982_v0 = vld [vmem:[%s2206_s12 + $0x8] sm:$0xff]   ;;  %v1984_v2 = vld [vmem:[%s2206_s12] sm:$0xff]   ;;  %v1996_v8 = vld [vmem:[%s2208_s17 + $0x50] ss:$8 sps:$4 sm:$0xff]  }
 0x145   : > { %1259 = vmatprep.mubr.bf16.mxu1 %v1990_v61  ;;  %v1997_v9 = vld [vmem:[%s2208_s17 + $0x24] ss:$8 sps:$4 sm:$0xff]   ;;  %v2001_v11 = vld [vmem:[%s2208_s17 + $0x20] ss:$8 sps:$4 sm:$0xff]   ;;  %v2003_v13 = vld [vmem:[%s2208_s17 + $0x34] ss:$8 sps:$4 sm:$0xff]  }
 0x146   : > { %v1999_v10 = vld [vmem:[%s2208_s17 + $0x64] ss:$8 sps:$4 sm:$0xff]   ;;  %v2002_v12 = vld [vmem:[%s2208_s17 + $0x60] ss:$8 sps:$4 sm:$0xff]   ;;  %v2005_v14 = vld [vmem:[%s2208_s17 + $0x74] ss:$8 sps:$4 sm:$0xff]  }
 0x147   : > { %1741 = vmatpush3.bf16.msra.mxu0 %v1974_v54  ;;  %1874 = vmatpush3.bf16.msra.mxu1 %v1974_v54  ;;  %v2007_v15 = vld [vmem:[%s2208_s17 + $0x30] ss:$8 sps:$4 sm:$0xff]   ;;  %v963_v21 = vld [vmem:[#allocation2 + $0x40] sm:$0xff] }
 0x148   : > { %1742 = vmatprep.subr.bf16.mxu0 %v1975_v55  ;;  %1867 = vmatprep.subr.bf16.mxu1 %v1975_v55  ;;  %v2008_v16 = vld [vmem:[%s2208_s17 + $0x70] ss:$8 sps:$4 sm:$0xff]   ;;  %v956_v29 = vld [vmem:[#allocation2] sm:$0xff] }
 0x149   : > { %v955_v19 = vld [vmem:[#allocation2 + $0x30] sm:$0xff]  ;;  %v964_v31 = vld [vmem:[#allocation2 + $0x20] sm:$0xff]  ;;  %v957_v39 = vld [vmem:[#allocation2 + $0x58] sm:$0xff] }
 0x14a   : > { %v965_v41 = vld [vmem:[#allocation2 + $0x10] sm:$0xff]  ;;  %v958_v49 = vld [vmem:[#allocation2 + $0x18] sm:$0xff]  ;;  %v967_v61 = vld [vmem:[#allocation2 + $0x60] sm:$0xff] }
 0x14b   : > { %1743 = vmatpush3.bf16.msra.mxu0 %v1976_v56  ;;  %1875 = vmatpush3.bf16.msra.mxu1 %v1976_v56  ;;  %v966_v52 = vld [vmem:[#allocation2 + $0x38] sm:$0xff] }
 0x14c   : > { %1744 = vmatprep.subr.bf16.mxu0 %v1977_v57  ;;  %1868 = vmatprep.subr.bf16.mxu1 %v1977_v57 }
 0x14f   : > { %1745 = vmatpush3.bf16.msra.mxu0 %v1978_v58  ;;  %1876 = vmatpush3.bf16.msra.mxu1 %v1978_v58 }
 0x150   : > { %1746 = vmatprep.subr.bf16.mxu0 %v1979_v59  ;;  %1869 = vmatprep.subr.bf16.mxu1 %v1979_v59  ;;  %v959_v59 = vld [vmem:[#allocation2 + $0x50] sm:$0xff] }
 0x153   : > { %1747 = vmatpush3.bf16.msra.mxu0 %v1980_v62  ;;  %1877 = vmatpush3.bf16.msra.mxu1 %v1980_v62 }
 0x154   : > { %1748 = vmatprep.subr.bf16.mxu0 %v1981_v63  ;;  %1870 = vmatprep.subr.bf16.mxu1 %v1981_v63 }
 0x157   : > { %1749 = vmatpush3.bf16.msra.mxu0 %v1982_v0  ;;  %1878 = vmatpush3.bf16.msra.mxu1 %v1982_v0 }
 0x158   : > { %1750 = vmatprep.subr.bf16.mxu0 %v1983_v1  ;;  %1871 = vmatprep.subr.bf16.mxu1 %v1983_v1 }
 0x15b   : > { %1751 = vmatpush3.bf16.msra.mxu0 %v1984_v2  ;;  %1879 = vmatpush3.bf16.msra.mxu1 %v1984_v2 }
 0x15e   : > { %1228 = vmatmul.mubr.bf16.vlgmr.msra.gmra.mxu0 %v1985_v3  ;;  %1260 = vmatmul.mubr.bf16.vlgmr.msra.gmra.mxu1 %v1988_v4 }
 0x15f   : > { %1235 = vmatprep.mubr.bf16.mxu0 %v1991_v5  ;;  %1267 = vmatprep.mubr.bf16.mxu1 %v1993_v6  ;;  %v960_v5 = vld [vmem:[#allocation2 + $0x68] sm:$0xff] }
 0x166   : > { %1236 = vmatmul.mubr.bf16.gmra.mxu0 %v1995_v7  ;;  %1268 = vmatmul.mubr.bf16.gmra.mxu1 %v1996_v8  ;;  %v968_v7 = vld [vmem:[#allocation2 + $0x70] sm:$0xff] }
 0x167   : > { %1243 = vmatprep.mubr.bf16.mxu0 %v1997_v9  ;;  %1275 = vmatprep.mubr.bf16.mxu1 %v1999_v10 }
 0x16e   : > { %1244 = vmatmul.mubr.bf16.gmra.mxu0 %v2001_v11  ;;  %1276 = vmatmul.mubr.bf16.gmra.mxu1 %v2002_v12 }
 0x16f   : > { %1251 = vmatprep.mubr.bf16.mxu0 %v2003_v13  ;;  %1283 = vmatprep.mubr.bf16.mxu1 %v2005_v14 }
 0x176   : > { %1252 = vmatmul.mubr.bf16.gmra.mxu0 %v2007_v15  ;;  %1284 = vmatmul.mubr.bf16.gmra.mxu1 %v2008_v16  ;;  %v961_v15 = vld [vmem:[#allocation2 + $0x8] sm:$0xff] }
 0x21e   : > { %v1752_v17 = vpop.f32.mrf.mxu0  ;;  %v1776_v18 = vpop.f32.mrf.mxu1 }
 0x220   : > { %v1753_v20 = vpop.f32.mrf.mxu0  ;;  %v1777_v22 = vpop.f32.mrf.mxu1 }
 0x221   : > { %v1754_v23 = vadd.f32 %v1753_v20, %v1752_v17  ;;  %v1778_v24 = vadd.f32 %v1777_v22, %v1776_v18  ;;  %v969_v17 = vld [vmem:[#allocation2 + $0x78] sm:$0xff] }
 0x222   : > { %v1755_v25 = vpop.f32.mrf.mxu0  ;;  %v1779_v26 = vpop.f32.mrf.mxu1 }
 0x223   : > { %v1292_v27 = vadd.f32 %v1754_v23, %v955_v19  ;;  %v1300_v28 = vadd.f32 %v1778_v24, %v963_v21 }
 0x224   : > { %v1756_v30 = vpop.f32.mrf.mxu0  ;;  %v1780_v32 = vpop.f32.mrf.mxu1 }
 0x225   : > { %1308 = vst [vmem:[#allocation2 + $0x30] sm:$0xff] %v1292_v27  ;;  %1316 = vst [vmem:[#allocation2 + $0x40] sm:$0xff] %v1300_v28  ;;  %v1757_v33 = vadd.f32 %v1756_v30, %v1755_v25  ;;  %v1781_v34 = vadd.f32 %v1780_v32, %v1779_v26  ;;  %v962_v25 = vld [vmem:[#allocation2 + $0x48] sm:$0xff] }
 0x226   : > { %v1758_v35 = vpop.f32.mrf.mxu0  ;;  %v1782_v36 = vpop.f32.mrf.mxu1  ;;  %v970_v27 = vld [vmem:[#allocation2 + $0x28] sm:$0xff] }
 0x227   : > { %v1293_v37 = vadd.f32 %v1757_v33, %v956_v29  ;;  %v1301_v38 = vadd.f32 %v1781_v34, %v964_v31 }
 0x228   : > { %v1759_v40 = vpop.f32.mrf.mxu0  ;;  %v1783_v42 = vpop.f32.mrf.mxu1 }
 0x229   : > { %1309 = vst [vmem:[#allocation2] sm:$0xff] %v1293_v37  ;;  %1317 = vst [vmem:[#allocation2 + $0x20] sm:$0xff] %v1301_v38  ;;  %v1760_v43 = vadd.f32 %v1759_v40, %v1758_v35  ;;  %v1784_v44 = vadd.f32 %v1783_v42, %v1782_v36 }
 0x22a   : > { %v1761_v45 = vpop.f32.mrf.mxu0  ;;  %v1785_v46 = vpop.f32.mrf.mxu1 }
 0x22b   : > { %v1294_v47 = vadd.f32 %v1760_v43, %v957_v39  ;;  %v1302_v48 = vadd.f32 %v1784_v44, %v965_v41 }
 0x22c   : > { %v1762_v51 = vpop.f32.mrf.mxu0  ;;  %v1786_v53 = vpop.f32.mrf.mxu1 }
 0x22d   : > { %1310 = vst [vmem:[#allocation2 + $0x58] sm:$0xff] %v1294_v47  ;;  %1318 = vst [vmem:[#allocation2 + $0x10] sm:$0xff] %v1302_v48  ;;  %v1763_v50 = vadd.f32 %v1762_v51, %v1761_v45  ;;  %v1787_v54 = vadd.f32 %v1786_v53, %v1785_v46 }
 0x22e   : > { %v1764_v55 = vpop.f32.mrf.mxu0  ;;  %v1788_v56 = vpop.f32.mrf.mxu1 }
 0x22f   : > { %v1295_v57 = vadd.f32 %v1763_v50, %v958_v49  ;;  %v1303_v58 = vadd.f32 %v1787_v54, %v966_v52 }
 0x230   : > { %v1765_v60 = vpop.f32.mrf.mxu0  ;;  %v1789_v62 = vpop.f32.mrf.mxu1 }
 0x231   : > { %1311 = vst [vmem:[#allocation2 + $0x18] sm:$0xff] %v1295_v57  ;;  %1319 = vst [vmem:[#allocation2 + $0x38] sm:$0xff] %v1303_v58  ;;  %v1766_v63 = vadd.f32 %v1765_v60, %v1764_v55  ;;  %v1790_v0 = vadd.f32 %v1789_v62, %v1788_v56 }
 0x232   : > { %v1767_v1 = vpop.f32.mrf.mxu0  ;;  %v1791_v2 = vpop.f32.mrf.mxu1 }
 0x233   : > { %v1296_v3 = vadd.f32 %v1766_v63, %v959_v59  ;;  %v1304_v4 = vadd.f32 %v1790_v0, %v967_v61 }
 0x234   : > { %v1768_v6 = vpop.f32.mrf.mxu0  ;;  %v1792_v8 = vpop.f32.mrf.mxu1 }
 0x235   : > { %1312 = vst [vmem:[#allocation2 + $0x50] sm:$0xff] %v1296_v3  ;;  %1320 = vst [vmem:[#allocation2 + $0x60] sm:$0xff] %v1304_v4  ;;  %v1769_v9 = vadd.f32 %v1768_v6, %v1767_v1  ;;  %v1793_v10 = vadd.f32 %v1792_v8, %v1791_v2 }
 0x236   : > { %v1770_v11 = vpop.f32.mrf.mxu0  ;;  %v1794_v12 = vpop.f32.mrf.mxu1 }
 0x237   : > { %v1297_v13 = vadd.f32 %v1769_v9, %v960_v5  ;;  %v1305_v14 = vadd.f32 %v1793_v10, %v968_v7 }
 0x238   : > { %v1771_v16 = vpop.f32.mrf.mxu0  ;;  %v1795_v18 = vpop.f32.mrf.mxu1 }
 0x239   : > { %1313 = vst [vmem:[#allocation2 + $0x68] sm:$0xff] %v1297_v13  ;;  %1321 = vst [vmem:[#allocation2 + $0x70] sm:$0xff] %v1305_v14  ;;  %v1772_v19 = vadd.f32 %v1771_v16, %v1770_v11  ;;  %v1796_v20 = vadd.f32 %v1795_v18, %v1794_v12 }
 0x23a   : > { %v1773_v21 = vpop.f32.mrf.mxu0  ;;  %v1797_v22 = vpop.f32.mrf.mxu1 }
 0x23b   : > { %v1298_v23 = vadd.f32 %v1772_v19, %v961_v15  ;;  %v1306_v24 = vadd.f32 %v1796_v20, %v969_v17 }
 0x23c   : > { %v1774_v26 = vpop.f32.mrf.mxu0  ;;  %v1798_v28 = vpop.f32.mrf.mxu1 }
 0x23d   : > { %1314 = vst [vmem:[#allocation2 + $0x8] sm:$0xff] %v1298_v23  ;;  %1322 = vst [vmem:[#allocation2 + $0x78] sm:$0xff] %v1306_v24  ;;  %v1775_v29 = vadd.f32 %v1774_v26, %v1773_v21  ;;  %v1799_v30 = vadd.f32 %v1798_v28, %v1797_v22  ;;  %1327 = sbr.rel (%p1622_p13) target bundleno = 589 (0x24d), region = 94 }
 0x23f   : > { %v1299_v31 = vadd.f32 %v1775_v29, %v962_v25  ;;  %v1307_v32 = vadd.f32 %v1799_v30, %v970_v27 }
 0x241   : > { %1315 = vst [vmem:[#allocation2 + $0x48] sm:$0xff] %v1299_v31  ;;  %1323 = vst [vmem:[#allocation2 + $0x28] sm:$0xff] %v1307_v32 }
 0x242   : > { %v1328_v33 = vld [vmem:[#allocation2 + $0x30] sm:$0xff]  ;;  %v1329_v34 = vld [vmem:[#allocation2] sm:$0xff]  ;;  %v1330_v35 = vld [vmem:[#allocation2 + $0x58] sm:$0xff] }
 0x243   : > { %v1660_v36 = vpack.c.bf16 %v1329_v34, %v1328_v33  ;;  %v1331_v37 = vld [vmem:[#allocation2 + $0x18] sm:$0xff]  ;;  %v1332_v38 = vld [vmem:[#allocation2 + $0x50] sm:$0xff]  ;;  %v1333_v39 = vld [vmem:[#allocation2 + $0x68] sm:$0xff] }
 0x244   : > { %v1665_v40 = vpack.c.bf16 %v1331_v37, %v1330_v35  ;;  %v1670_v41 = vpack.c.bf16 %v1333_v39, %v1332_v38  ;;  %v1334_v42 = vld [vmem:[#allocation2 + $0x8] sm:$0xff]  ;;  %v1336_v44 = vld [vmem:[#allocation2 + $0x40] sm:$0xff]  ;;  %v1338_v47 = vld [vmem:[#allocation2 + $0x10] sm:$0xff] }
 0x245   : > { %1661 = vst [vmem:[%s2201_s27] sm:$0xff] %v1660_v36   ;;  %v1337_v46 = vld [vmem:[#allocation2 + $0x20] sm:$0xff]  ;;  %v1339_v48 = vld [vmem:[#allocation2 + $0x38] sm:$0xff]  ;;  %v1341_v53 = vld [vmem:[#allocation2 + $0x70] sm:$0xff] }
 0x246   : > { %1697 = vst [vmem:[%s2201_s27 + $0x8] sm:$0xff] %v1665_v40   ;;  %1698 = vst [vmem:[%s2201_s27 + $0x10] sm:$0xff] %v1670_v41   ;;  %v1680_v49 = vpack.c.bf16 %v1337_v46, %v1336_v44  ;;  %v1685_v51 = vpack.c.bf16 %v1339_v48, %v1338_v47  ;;  %v1340_v52 = vld [vmem:[#allocation2 + $0x60] sm:$0xff]  ;;  %v1342_v50 = vld [vmem:[#allocation2 + $0x78] sm:$0xff] }
 0x247   : > { %v1690_v54 = vpack.c.bf16 %v1341_v53, %v1340_v52 }
 0x248   : > { %v1335_v43 = vld [vmem:[#allocation2 + $0x48] sm:$0xff]  ;;  %1700 = vst [vmem:[%s2201_s27 + $0x20] sm:$0xff] %v1680_v49   ;;  %1701 = vst [vmem:[%s2201_s27 + $0x28] sm:$0xff] %v1685_v51  }
 0x249   : > { %v1675_v45 = vpack.c.bf16 %v1335_v43, %v1334_v42  ;;  %v1343_v55 = vld [vmem:[#allocation2 + $0x28] sm:$0xff]  ;;  %1702 = vst [vmem:[%s2201_s27 + $0x30] sm:$0xff] %v1690_v54  }
 0x24a   : > { %v1695_v56 = vpack.c.bf16 %v1343_v55, %v1342_v50 }
 0x24b   : > { %1699 = vst [vmem:[%s2201_s27 + $0x18] sm:$0xff] %v1675_v45  }
 0x24c   : > { %1703 = vst [vmem:[%s2201_s27 + $0x38] sm:$0xff] %v1695_v56  }
 0x24d PF: > { %s17_s30 = sadd.s32 1, %s2063_s30   ;;  %s2370_s24 = smov %s2043_s25 }
 0x24e   : > { %p14_p0 = scmp.ge.s32.totalorder %s17_s30, 8   ;;  %s2371_s25 = smov %s2156_s14 }
 0x24f   : > { %s2372_s26 = smov %s2055_s28  ;;  %s2373_s27 = smov %s2059_s29 }
 0x250   : > { %s2374_s28 = smov %s2377_s8  ;;  %s2375_s29 = smov %s2381_s9 }
 0x251   :  { %16 = sbr.rel (!%p14_p0) target bundleno = 7 (0x7), region = 138 }

// kernel: wrgcn_forward.3
= control target key start
LH: loop header
LB: loop body
LE: loop exit
PB: predicated region body
PF: predicated region fallthrough
CT: control target
= control target key end

     0   :  { %s2223_s0 = inlined_call_operand.vmem [shape: bf16[256,128], index: 0, kind: input, shape index: {}]   ;;  %s2224_s1 = inlined_call_operand.vmem [shape: bf16[256,128], index: 1, kind: input, shape index: {}]   ;;  %s2225_s2 = inlined_call_operand.vmem [shape: bf16[256,768], index: 2, kind: input, shape index: {}]   ;;  %s2226_s3 = inlined_call_operand.vmem [shape: bf16[768,128], index: 3, kind: input, shape index: {}]   ;;  %s2227_s4 = inlined_call_operand.vmem [shape: bf16[128,128], index: 4, kind: input, shape index: {}]   ;;  %s2228_s5 = inlined_call_operand.vmem [shape: bf16[128,128], index: 5, kind: input, shape index: {}]   ;;  %s2229_s6 = inlined_call_operand.vmem [shape: f32[1,128], index: 6, kind: input, shape index: {}]   ;;  %s2230_s7 = inlined_call_operand.vmem [shape: f32[256,128], index: 7, kind: output, shape index: {}]  }
   0x1   :  { %2232 = sst [smem:[#allocation5_spill]] %s2225_s2 }
   0x2   :  { %s1962_s24 = smov 0   ;;  %s1964_s25 = smov 0  }
   0x3   :  { %s1966_s26 = smov 0   ;;  %s1968_s27 = smov 0  }
   0x4   :  { %s1970_s28 = smov 0   ;;  %s1972_s29 = smov 0  }
   0x5   :  { %s1974_s30 = smov 0  }
   0x6 LB: > { %s26_s8 = sadd.s32 1, %s1912_s28  ;;  %s29_s9 = sadd.s32 1, %s1916_s29  ;;  %s1920_s30 = sphi %s1974_s30, %s17_s30   ;;  %s1916_s29 = sphi %s1972_s29, %s2241_s29   ;;  %s1912_s28 = sphi %s1970_s28, %s2240_s28   ;;  %s1908_s27 = sphi %s1968_s27, %s2239_s27   ;;  %s1904_s26 = sphi %s1966_s26, %s2238_s26   ;;  %s1900_s25 = sphi %s1964_s25, %s2237_s25   ;;  %s1896_s24 = sphi %s1962_s24, %s2236_s24  }
   0x7   : > { %p27_p0 = scmp.ge.s32.totalorder %s26_s8, 3  ;;  %p97_p1 = scmp.ne.s32.totalorder %s1900_s25, %s1896_s24 }
   0x8   : > { %p98_p2 = scmp.eq.s32.totalorder %s1920_s30, 0  ;;  %s90_s13 = sadd.s32 1, %s1900_s25 }
   0x9   : > { %s2243_s8 = smov (%p27_p0, %s26_s8), 0  ;;  %s2245_s9 = smov (!%p27_p0, %s29_s9), %s1916_s29 }
   0xa   : > { %p99_p3 = por %p98_p2, %p97_p1  ;;  %p31_p4 = scmp.ge.s32.totalorder %s2245_s9, 2 }
   0xb   : > { %s86_s10 = ssub.s32 %s1912_s28, %s2243_s8  ;;  %p1476_p6 = scmp.ge.s32.totalorder %s1920_s30, 6 }
   0xc   : > { %s2247_s9 = smov (%p31_p4, %s2245_s9), 0 }
   0xd   : > { %2233 = sst [smem:[#allocation4_spill]] %s2247_s9  ;;  %s85_s11 = ssub.s32 %s1916_s29, %s2247_s9 }
   0xe   : > { %s87_s12 = sor.u32 %s86_s10, %s85_s11  ;;  %247 = sbr.rel (%p1476_p6) target bundleno = 37 (0x25), region = 28 }
   0xf   : > { %p88_p5 = scmp.eq.s32.totalorder %s87_s12, 0 }
  0x11   : > { %s2013_s14 = scalar_select %p88_p5, %s1900_s25, %s90_s13  }
  0x13   : > { %268 = sbr.rel (!%p99_p3) target bundleno = 37 (0x25), region = 40  ;;  %s270_s15 = sand.u32 (%p99_p3), 1, %s1900_s25  }
  0x14   : > { %s1479_s16 = sshll.u32 (%p99_p3), %s1912_s28, 1  ;;  %s1477_s17 = sshll.u32 (%p99_p3), %s270_s15, 7 }
  0x15   : > { %s1737_s18 = smul.u32 (%p99_p3), 96, %s1916_s29  ;;  %s2234_s2 = sld [smem:[#allocation5_spill]] (%p99_p3) }
  0x16   : > { %s272_s10 = scalar_lea.vmem (%p99_p3), [#allocation3], %s1477_s17 }
  0x17   : > { %s276_s19 = sadd.s32 (%p99_p3), %s1737_s18, %s1479_s16 }
  0x18   : > { %s1481_s20 = sshll.u32 %s276_s19, 2 }
  0x1b   : > { %s2022_s23 = scalar_lea.vmem %s2234_s2, %s1481_s20 }
  0x1c   : > { %v337_v0 = vld [vmem:[%s2022_s23] sm:$0xff]  ;;  %v339_v1 = vld [vmem:[%s2022_s23 + $0x18] sm:$0xff]  ;;  %v341_v2 = vld [vmem:[%s2022_s23 + $0x30] sm:$0xff] }
  0x1d   : > { %338 = vst [vmem:[%s272_s10] sm:$0xff] %v337_v0  ;;  %340 = vst [vmem:[%s272_s10 + $0x8] sm:$0xff] %v339_v1  ;;  %v343_v3 = vld [vmem:[%s2022_s23 + $0x48] sm:$0xff]  ;;  %v345_v4 = vld [vmem:[%s2022_s23 + $0x60] sm:$0xff] }
  0x1e   : > { %342 = vst [vmem:[%s272_s10 + $0x10] sm:$0xff] %v341_v2  ;;  %v347_v5 = vld [vmem:[%s2022_s23 + $0x78] sm:$0xff]  ;;  %344 = vst [vmem:[%s272_s10 + $0x18] sm:$0xff] %v343_v3  ;;  %v349_v6 = vld [vmem:[%s2022_s23 + $0x90] sm:$0xff] }
  0x1f   : > { %346 = vst [vmem:[%s272_s10 + $0x20] sm:$0xff] %v345_v4  ;;  %348 = vst [vmem:[%s272_s10 + $0x28] sm:$0xff] %v347_v5  ;;  %v351_v7 = vld [vmem:[%s2022_s23 + $0xa8] sm:$0xff]  ;;  %v353_v8 = vld [vmem:[%s2022_s23 + $0xc0] sm:$0xff] }
  0x20   : > { %350 = vst [vmem:[%s272_s10 + $0x30] sm:$0xff] %v349_v6  ;;  %352 = vst [vmem:[%s272_s10 + $0x38] sm:$0xff] %v351_v7  ;;  %v355_v9 = vld [vmem:[%s2022_s23 + $0xd8] sm:$0xff]  ;;  %v357_v10 = vld [vmem:[%s2022_s23 + $0xf0] sm:$0xff] }
  0x21   : > { %354 = vst [vmem:[%s272_s10 + $0x40] sm:$0xff] %v353_v8  ;;  %v359_v11 = vld [vmem:[%s2022_s23 + $0x108] sm:$0xff]  ;;  %356 = vst [vmem:[%s272_s10 + $0x48] sm:$0xff] %v355_v9  ;;  %v361_v12 = vld [vmem:[%s2022_s23 + $0x120] sm:$0xff] }
  0x22   : > { %358 = vst [vmem:[%s272_s10 + $0x50] sm:$0xff] %v357_v10  ;;  %360 = vst [vmem:[%s272_s10 + $0x58] sm:$0xff] %v359_v11  ;;  %v363_v13 = vld [vmem:[%s2022_s23 + $0x138] sm:$0xff]  ;;  %v365_v14 = vld [vmem:[%s2022_s23 + $0x150] sm:$0xff] }
  0x23   : > { %362 = vst [vmem:[%s272_s10 + $0x60] sm:$0xff] %v361_v12  ;;  %364 = vst [vmem:[%s272_s10 + $0x68] sm:$0xff] %v363_v13  ;;  %v367_v15 = vld [vmem:[%s2022_s23 + $0x168] sm:$0xff] }
  0x24   : > { %366 = vst [vmem:[%s272_s10 + $0x70] sm:$0xff] %v365_v14  ;;  %368 = vst [vmem:[%s272_s10 + $0x78] sm:$0xff] %v367_v15 }
  0x25 PF: > { %p1482_p7 = scmp.ge.s32.totalorder %s1920_s30, 1  ;;  %p382_p8 = scmp.lt.s32.totalorder %s1920_s30, 7 }
  0x27   : > { %p383_p9 = pnand %p1482_p7, %p382_p8 }
  0x28   : > { %s389_s11 = sand.u32 (!%p383_p9), 1, %s1896_s24   ;;  %s1484_s12 = sshll.u32 (!%p383_p9), %s1908_s27, 4 }
  0x29   : > { %386 = sbr.rel (%p383_p9) target bundleno = 587 (0x24b), region = 82  ;;  %s1483_s13 = sshll.u32 (!%p383_p9), %s389_s11, 7 }
  0x2a   : > { %p436_p10 = scmp.lt.s32.totalorder (!%p383_p9), %s1484_s12, 31  ;;  %s1488_s15 = sshll.u32 (!%p383_p9), %s1904_s26, 5 }
  0x2b   : > { %p450_p11 = scmp.lt.s32.totalorder (!%p383_p9), %s1488_s15, 95  ;;  %s2065_s18 = scalar_lea.vmem (!%p383_p9), [#allocation3], %s1483_s13 }
  0x2c   : > { %p1492_p12 = scmp.ne.s32.totalorder (!%p383_p9), %s1904_s26, 0 }
  0x2e   : > { %s2249_s12 = smov (!%p436_p10, %s1484_s12), 31  ;;  %s2251_s15 = smov (!%p450_p11, %s1488_s15), 95 }
  0x2f   : > { %s1485_s16 = sshll.u32 %s2249_s12, 2  ;;  %s1491_s17 = sshll.u32 %s2249_s12, 3 }
  0x30   : > { %s2048_s20 = scalar_lea.vmem %s2223_s0, %s1485_s16  ;;  %s2053_s23 = scalar_lea.vmem %s2224_s1, %s1485_s16 }
  0x31   : > { %s2058_s10 = scalar_lea.vmem %s2230_s7, %s1491_s17  ;;  %s1489_s11 = sshll.u32 %s2251_s15, 2 }
  0x32   : > { %s2063_s12 = scalar_lea.vmem %s2226_s3, %s1489_s11  ;;  %465 = sbr.rel (%p1492_p12) target bundleno = 317 (0x13d), region = 90 }
  0x37   : > { %v1794_v16 = vld [vmem:[%s2228_s5 + $0x38] sm:$0xff]   ;;  %v1796_v18 = vld [vmem:[%s2228_s5 + $0x30] sm:$0xff]   ;;  %v1798_v20 = vld [vmem:[%s2228_s5 + $0x28] sm:$0xff]  }
  0x38   : > { %v1795_v17 = vld [vmem:[%s2227_s4 + $0x38] sm:$0xff]   ;;  %1657 = vmatprep.subr.bf16.mxu0 %v1794_v16  ;;  %v1797_v19 = vld [vmem:[%s2227_s4 + $0x30] sm:$0xff]   ;;  %v1799_v21 = vld [vmem:[%s2227_s4 + $0x28] sm:$0xff]  }
  0x39   : > { %1689 = vmatprep.subr.bf16.mxu1 %v1795_v17  ;;  %1658 = vmatpush3.bf16.msra.mxu0 %v1794_v16  ;;  %v1800_v22 = vld [vmem:[%s2228_s5 + $0x20] sm:$0xff]   ;;  %v1802_v24 = vld [vmem:[%s2228_s5 + $0x18] sm:$0xff]   ;;  %v1804_v26 = vld [vmem:[%s2228_s5 + $0x10] sm:$0xff]  }
  0x3a   : > { %1690 = vmatpush3.bf16.msra.mxu1 %v1795_v17  ;;  %1659 = vmatprep.subr.bf16.mxu0 %v1796_v18  ;;  %v1801_v23 = vld [vmem:[%s2227_s4 + $0x20] sm:$0xff]   ;;  %v1803_v25 = vld [vmem:[%s2227_s4 + $0x18] sm:$0xff]   ;;  %v1805_v27 = vld [vmem:[%s2227_s4 + $0x10] sm:$0xff]  }
  0x3b   : > { %1691 = vmatprep.subr.bf16.mxu1 %v1797_v19  ;;  %v1810_v28 = vld [vmem:[%s2048_s20] sm:$0xff]   ;;  %v1806_v30 = vld [vmem:[%s2228_s5 + $0x8] sm:$0xff]   ;;  %v1814_v36 = vld [vmem:[%s2048_s20 + $0x10] sm:$0xff]  }
  0x3c   : > { %v1811_v29 = vld [vmem:[%s2053_s23] sm:$0xff]   ;;  %1673 = vmatprep.mubr.bf16.mxu0 %v1810_v28  ;;  %v1807_v31 = vld [vmem:[%s2227_s4 + $0x8] sm:$0xff]   ;;  %v1815_v37 = vld [vmem:[%s2053_s23 + $0x10] sm:$0xff]  }
  0x3d   : > { %1660 = vmatpush3.bf16.msra.mxu0 %v1796_v18  ;;  %1705 = vmatprep.mubr.bf16.mxu1 %v1811_v29  ;;  %v1808_v32 = vld [vmem:[%s2228_s5] sm:$0xff]   ;;  %v1812_v34 = vld [vmem:[%s2048_s20 + $0x8] sm:$0xff]   ;;  %v1816_v38 = vld [vmem:[%s2048_s20 + $0x18] sm:$0xff]  }
  0x3e   : > { %1692 = vmatpush3.bf16.msra.mxu1 %v1797_v19  ;;  %1661 = vmatprep.subr.bf16.mxu0 %v1798_v20  ;;  %v1809_v33 = vld [vmem:[%s2227_s4] sm:$0xff]   ;;  %v1813_v35 = vld [vmem:[%s2053_s23 + $0x8] sm:$0xff]   ;;  %v1817_v39 = vld [vmem:[%s2053_s23 + $0x18] sm:$0xff]  }
  0x3f   : > { %1693 = vmatprep.subr.bf16.mxu1 %v1799_v21  ;;  %v1818_v40 = vld [vmem:[%s2048_s20 + $0x20] sm:$0xff]   ;;  %v1820_v42 = vld [vmem:[%s2048_s20 + $0x28] sm:$0xff]   ;;  %v1822_v44 = vld [vmem:[%s2048_s20 + $0x30] sm:$0xff]  }
  0x40   : > { %v1819_v41 = vld [vmem:[%s2053_s23 + $0x20] sm:$0xff]   ;;  %v1821_v43 = vld [vmem:[%s2053_s23 + $0x28] sm:$0xff]   ;;  %v1823_v45 = vld [vmem:[%s2053_s23 + $0x30] sm:$0xff]  }
  0x41   : > { %1662 = vmatpush3.bf16.msra.mxu0 %v1798_v20  ;;  %v1824_v46 = vld [vmem:[%s2048_s20 + $0x38] sm:$0xff]   ;;  %v2135_v50 = vld [vmem:[%s2229_s6] ss:$0 sm:$0xff] }
  0x42   : > { %1694 = vmatpush3.bf16.msra.mxu1 %v1799_v21  ;;  %1663 = vmatprep.subr.bf16.mxu0 %v1800_v22  ;;  %v1825_v47 = vld [vmem:[%s2053_s23 + $0x38] sm:$0xff]  }
  0x43   : > { %1695 = vmatprep.subr.bf16.mxu1 %v1801_v23 }
  0x45   : > { %1664 = vmatpush3.bf16.msra.mxu0 %v1800_v22 }
  0x46   : > { %1696 = vmatpush3.bf16.msra.mxu1 %v1801_v23  ;;  %1665 = vmatprep.subr.bf16.mxu0 %v1802_v24 }
  0x47   : > { %1697 = vmatprep.subr.bf16.mxu1 %v1803_v25 }
  0x49   : > { %1666 = vmatpush3.bf16.msra.mxu0 %v1802_v24 }
  0x4a   : > { %1698 = vmatpush3.bf16.msra.mxu1 %v1803_v25  ;;  %1667 = vmatprep.subr.bf16.mxu0 %v1804_v26 }
  0x4b   : > { %1699 = vmatprep.subr.bf16.mxu1 %v1805_v27 }
  0x4d   : > { %1668 = vmatpush3.bf16.msra.mxu0 %v1804_v26 }
  0x4e   : > { %1700 = vmatpush3.bf16.msra.mxu1 %v1805_v27  ;;  %1669 = vmatprep.subr.bf16.mxu0 %v1806_v30 }
  0x4f   : > { %1701 = vmatprep.subr.bf16.mxu1 %v1807_v31 }
  0x51   : > { %1670 = vmatpush3.bf16.msra.mxu0 %v1806_v30 }
  0x52   : > { %1702 = vmatpush3.bf16.msra.mxu1 %v1807_v31  ;;  %1671 = vmatprep.subr.bf16.mxu0 %v1808_v32 }
  0x53   : > { %1703 = vmatprep.subr.bf16.mxu1 %v1809_v33 }
  0x55   : > { %1672 = vmatpush3.bf16.msra.mxu0 %v1808_v32 }
  0x56   : > { %1704 = vmatpush3.bf16.msra.mxu1 %v1809_v33 }
  0x58   : > { %1674 = vmatmul.mubr.bf16.vlgmr.msra.gmra.mxu0 %v1812_v34 }
  0x59   : > { %1706 = vmatmul.mubr.bf16.vlgmr.msra.gmra.mxu1 %v1813_v35  ;;  %1677 = vmatprep.mubr.bf16.mxu0 %v1814_v36 }
  0x5a   : > { %1709 = vmatprep.mubr.bf16.mxu1 %v1815_v37 }
  0x60   : > { %1678 = vmatmul.mubr.bf16.gmra.mxu0 %v1816_v38 }
  0x61   : > { %1710 = vmatmul.mubr.bf16.gmra.mxu1 %v1817_v39  ;;  %1681 = vmatprep.mubr.bf16.mxu0 %v1818_v40 }
  0x62   : > { %1713 = vmatprep.mubr.bf16.mxu1 %v1819_v41 }
  0x68   : > { %1682 = vmatmul.mubr.bf16.gmra.mxu0 %v1820_v42 }
  0x69   : > { %1714 = vmatmul.mubr.bf16.gmra.mxu1 %v1821_v43  ;;  %1685 = vmatprep.mubr.bf16.mxu0 %v1822_v44 }
  0x6a   : > { %1717 = vmatprep.mubr.bf16.mxu1 %v1823_v45 }
  0x70   : > { %1686 = vmatmul.mubr.bf16.gmra.mxu0 %v1824_v46 }
  0x71   : > { %1718 = vmatmul.mubr.bf16.gmra.mxu1 %v1825_v47 }
 0x118   : > { %v1675_v48 = vpop.f32.mrf.mxu0 }
 0x119   : > { %v1707_v49 = vpop.f32.mrf.mxu1 }
 0x11a   : > { %v862_v51 = vadd.f32 %v1707_v49, %v1675_v48  ;;  %v660_v52 = vpop.f32.mrf.mxu0 }
 0x11b   : > { %v853_v53 = vpop.f32.mrf.mxu1 }
 0x11c   : > { %v925_v54 = vadd.f32 %v2135_v50, %v862_v51  ;;  %v854_v55 = vadd.f32 %v853_v53, %v660_v52  ;;  %v1676_v56 = vpop.f32.mrf.mxu0 }
 0x11d   : > { %v1708_v57 = vpop.f32.mrf.mxu1 }
 0x11e   : > { %941 = vst [vmem:[#allocation2 + $0x58] sm:$0xff] %v925_v54  ;;  %v923_v58 = vadd.f32 %v2135_v50, %v854_v55  ;;  %v865_v59 = vadd.f32 %v1708_v57, %v1676_v56  ;;  %v663_v60 = vpop.f32.mrf.mxu0 }
 0x11f   : > { %v856_v61 = vpop.f32.mrf.mxu1 }
 0x120   : > { %939 = vst [vmem:[#allocation2 + $0x30] sm:$0xff] %v923_v58  ;;  %v926_v62 = vadd.f32 %v2135_v50, %v865_v59  ;;  %v857_v63 = vadd.f32 %v856_v61, %v663_v60  ;;  %v1679_v0 = vpop.f32.mrf.mxu0 }
 0x121   : > { %v1711_v1 = vpop.f32.mrf.mxu1 }
 0x122   : > { %942 = vst [vmem:[#allocation2 + $0x18] sm:$0xff] %v926_v62  ;;  %v924_v2 = vadd.f32 %v2135_v50, %v857_v63  ;;  %v878_v3 = vadd.f32 %v1711_v1, %v1679_v0  ;;  %v676_v4 = vpop.f32.mrf.mxu0 }
 0x123   : > { %v869_v5 = vpop.f32.mrf.mxu1 }
 0x124   : > { %940 = vst [vmem:[#allocation2] sm:$0xff] %v924_v2  ;;  %v929_v6 = vadd.f32 %v2135_v50, %v878_v3  ;;  %v870_v7 = vadd.f32 %v869_v5, %v676_v4  ;;  %v1680_v8 = vpop.f32.mrf.mxu0 }
 0x125   : > { %v1712_v9 = vpop.f32.mrf.mxu1 }
 0x126   : > { %945 = vst [vmem:[#allocation2 + $0x8] sm:$0xff] %v929_v6  ;;  %v927_v10 = vadd.f32 %v2135_v50, %v870_v7  ;;  %v881_v11 = vadd.f32 %v1712_v9, %v1680_v8  ;;  %v679_v12 = vpop.f32.mrf.mxu0 }
 0x127   : > { %v872_v13 = vpop.f32.mrf.mxu1 }
 0x128   : > { %943 = vst [vmem:[#allocation2 + $0x50] sm:$0xff] %v927_v10  ;;  %v930_v14 = vadd.f32 %v2135_v50, %v881_v11  ;;  %v873_v15 = vadd.f32 %v872_v13, %v679_v12  ;;  %v1683_v16 = vpop.f32.mrf.mxu0 }
 0x129   : > { %v1715_v17 = vpop.f32.mrf.mxu1 }
 0x12a   : > { %946 = vst [vmem:[#allocation2 + $0x48] sm:$0xff] %v930_v14  ;;  %v928_v18 = vadd.f32 %v2135_v50, %v873_v15  ;;  %v894_v19 = vadd.f32 %v1715_v17, %v1683_v16  ;;  %v692_v20 = vpop.f32.mrf.mxu0 }
 0x12b   : > { %v885_v21 = vpop.f32.mrf.mxu1 }
 0x12c   : > { %944 = vst [vmem:[#allocation2 + $0x68] sm:$0xff] %v928_v18  ;;  %v933_v22 = vadd.f32 %v2135_v50, %v894_v19  ;;  %v886_v23 = vadd.f32 %v885_v21, %v692_v20  ;;  %v1684_v24 = vpop.f32.mrf.mxu0 }
 0x12d   : > { %v1716_v25 = vpop.f32.mrf.mxu1 }
 0x12e   : > { %949 = vst [vmem:[#allocation2 + $0x10] sm:$0xff] %v933_v22  ;;  %v931_v26 = vadd.f32 %v2135_v50, %v886_v23  ;;  %v897_v27 = vadd.f32 %v1716_v25, %v1684_v24  ;;  %v695_v28 = vpop.f32.mrf.mxu0 }
 0x12f   : > { %v888_v29 = vpop.f32.mrf.mxu1 }
 0x130   : > { %947 = vst [vmem:[#allocation2 + $0x40] sm:$0xff] %v931_v26  ;;  %v934_v30 = vadd.f32 %v2135_v50, %v897_v27  ;;  %v889_v31 = vadd.f32 %v888_v29, %v695_v28  ;;  %v1687_v32 = vpop.f32.mrf.mxu0 }
 0x131   : > { %v1719_v33 = vpop.f32.mrf.mxu1 }
 0x132   : > { %950 = vst [vmem:[#allocation2 + $0x38] sm:$0xff] %v934_v30  ;;  %v932_v34 = vadd.f32 %v2135_v50, %v889_v31  ;;  %v910_v35 = vadd.f32 %v1719_v33, %v1687_v32  ;;  %v708_v36 = vpop.f32.mrf.mxu0 }
 0x133   : > { %v901_v37 = vpop.f32.mrf.mxu1 }
 0x134   : > { %948 = vst [vmem:[#allocation2 + $0x20] sm:$0xff] %v932_v34  ;;  %v937_v38 = vadd.f32 %v2135_v50, %v910_v35  ;;  %v902_v39 = vadd.f32 %v901_v37, %v708_v36  ;;  %v1688_v40 = vpop.f32.mrf.mxu0 }
 0x135   : > { %v1720_v41 = vpop.f32.mrf.mxu1 }
 0x136   : > { %953 = vst [vmem:[#allocation2 + $0x78] sm:$0xff] %v937_v38  ;;  %v935_v42 = vadd.f32 %v2135_v50, %v902_v39  ;;  %v913_v43 = vadd.f32 %v1720_v41, %v1688_v40  ;;  %v711_v44 = vpop.f32.mrf.mxu0 }
 0x137   : > { %v904_v45 = vpop.f32.mrf.mxu1 }
 0x138   : > { %951 = vst [vmem:[#allocation2 + $0x60] sm:$0xff] %v935_v42  ;;  %v938_v46 = vadd.f32 %v2135_v50, %v913_v43  ;;  %v905_v47 = vadd.f32 %v904_v45, %v711_v44 }
 0x13a   : > { %954 = vst [vmem:[#allocation2 + $0x28] sm:$0xff] %v938_v46  ;;  %v936_v48 = vadd.f32 %v2135_v50, %v905_v47 }
 0x13c   : > { %952 = vst [vmem:[#allocation2 + $0x70] sm:$0xff] %v936_v48 }
 0x13d PF: > { %v1826_v49 = vld [vmem:[%s2063_s12 + $0x78] sm:$0xff]   ;;  %v1828_v52 = vld [vmem:[%s2063_s12 + $0x70] sm:$0xff]   ;;  %v1830_v50 = vld [vmem:[%s2063_s12 + $0x68] sm:$0xff]   ;;  %p1558_p13 = scmp.ne.s32.totalorder %s1904_s26, 2 }
 0x13e   : > { %v1827_v51 = vld [vmem:[%s2063_s12 + $0x38] sm:$0xff]   ;;  %1593 = vmatprep.subr.bf16.mxu0 %v1826_v49  ;;  %1721 = vmatprep.subr.bf16.mxu1 %v1826_v49  ;;  %v1829_v53 = vld [vmem:[%s2063_s12 + $0x30] sm:$0xff]   ;;  %v1831_v54 = vld [vmem:[%s2063_s12 + $0x28] sm:$0xff]  }
 0x13f   : > { %1594 = vmatpush3.bf16.msra.mxu0 %v1827_v51  ;;  %1729 = vmatpush3.bf16.msra.mxu1 %v1827_v51  ;;  %v1832_v55 = vld [vmem:[%s2063_s12 + $0x60] sm:$0xff]   ;;  %v1834_v57 = vld [vmem:[%s2063_s12 + $0x58] sm:$0xff]   ;;  %v1836_v59 = vld [vmem:[%s2063_s12 + $0x50] sm:$0xff]  }
 0x140   : > { %1595 = vmatprep.subr.bf16.mxu0 %v1828_v52  ;;  %1722 = vmatprep.subr.bf16.mxu1 %v1828_v52  ;;  %v1833_v56 = vld [vmem:[%s2063_s12 + $0x20] sm:$0xff]   ;;  %v1835_v58 = vld [vmem:[%s2063_s12 + $0x18] sm:$0xff]   ;;  %v1837_v62 = vld [vmem:[%s2063_s12 + $0x10] sm:$0xff]  }
 0x141   : > { %v1844_v60 = vld [vmem:[%s2065_s18 + $0x4] ss:$8 sps:$4 sm:$0xff]   ;;  %v1842_v3 = vld [vmem:[%s2065_s18] ss:$8 sps:$4 sm:$0xff]   ;;  %v1848_v5 = vld [vmem:[%s2065_s18 + $0x14] ss:$8 sps:$4 sm:$0xff]  }
 0x142   : > { %v1847_v61 = vld [vmem:[%s2065_s18 + $0x44] ss:$8 sps:$4 sm:$0xff]   ;;  %1227 = vmatprep.mubr.bf16.mxu0 %v1844_v60  ;;  %v1845_v4 = vld [vmem:[%s2065_s18 + $0x40] ss:$8 sps:$4 sm:$0xff]   ;;  %v1850_v6 = vld [vmem:[%s2065_s18 + $0x54] ss:$8 sps:$4 sm:$0xff]  }
 0x143   : > { %1596 = vmatpush3.bf16.msra.mxu0 %v1829_v53  ;;  %1730 = vmatpush3.bf16.msra.mxu1 %v1829_v53  ;;  %v1838_v63 = vld [vmem:[%s2063_s12 + $0x48] sm:$0xff]   ;;  %v1840_v1 = vld [vmem:[%s2063_s12 + $0x40] sm:$0xff]   ;;  %v1852_v7 = vld [vmem:[%s2065_s18 + $0x10] ss:$8 sps:$4 sm:$0xff]  }
 0x144   : > { %1597 = vmatprep.subr.bf16.mxu0 %v1830_v50  ;;  %1723 = vmatprep.subr.bf16.mxu1 %v1830_v50  ;;  %v1839_v0 = vld [vmem:[%s2063_s12 + $0x8] sm:$0xff]   ;;  %v1841_v2 = vld [vmem:[%s2063_s12] sm:$0xff]   ;;  %v1853_v8 = vld [vmem:[%s2065_s18 + $0x50] ss:$8 sps:$4 sm:$0xff]  }
 0x145   : > { %1259 = vmatprep.mubr.bf16.mxu1 %v1847_v61  ;;  %v1854_v9 = vld [vmem:[%s2065_s18 + $0x24] ss:$8 sps:$4 sm:$0xff]   ;;  %v1858_v11 = vld [vmem:[%s2065_s18 + $0x20] ss:$8 sps:$4 sm:$0xff]   ;;  %v1860_v13 = vld [vmem:[%s2065_s18 + $0x34] ss:$8 sps:$4 sm:$0xff]  }
 0x146   : > { %v1856_v10 = vld [vmem:[%s2065_s18 + $0x64] ss:$8 sps:$4 sm:$0xff]   ;;  %v1859_v12 = vld [vmem:[%s2065_s18 + $0x60] ss:$8 sps:$4 sm:$0xff]   ;;  %v1862_v14 = vld [vmem:[%s2065_s18 + $0x74] ss:$8 sps:$4 sm:$0xff]  }
 0x147   : > { %1598 = vmatpush3.bf16.msra.mxu0 %v1831_v54  ;;  %1731 = vmatpush3.bf16.msra.mxu1 %v1831_v54  ;;  %v1864_v15 = vld [vmem:[%s2065_s18 + $0x30] ss:$8 sps:$4 sm:$0xff]   ;;  %v963_v21 = vld [vmem:[#allocation2 + $0x40] sm:$0xff] }
 0x148   : > { %1599 = vmatprep.subr.bf16.mxu0 %v1832_v55  ;;  %1724 = vmatprep.subr.bf16.mxu1 %v1832_v55  ;;  %v1865_v16 = vld [vmem:[%s2065_s18 + $0x70] ss:$8 sps:$4 sm:$0xff]   ;;  %v956_v29 = vld [vmem:[#allocation2] sm:$0xff] }
 0x149   : > { %v955_v19 = vld [vmem:[#allocation2 + $0x30] sm:$0xff]  ;;  %v964_v31 = vld [vmem:[#allocation2 + $0x20] sm:$0xff]  ;;  %v957_v39 = vld [vmem:[#allocation2 + $0x58] sm:$0xff] }
 0x14a   : > { %v965_v41 = vld [vmem:[#allocation2 + $0x10] sm:$0xff]  ;;  %v958_v49 = vld [vmem:[#allocation2 + $0x18] sm:$0xff]  ;;  %v967_v61 = vld [vmem:[#allocation2 + $0x60] sm:$0xff] }
 0x14b   : > { %1600 = vmatpush3.bf16.msra.mxu0 %v1833_v56  ;;  %1732 = vmatpush3.bf16.msra.mxu1 %v1833_v56  ;;  %v966_v52 = vld [vmem:[#allocation2 + $0x38] sm:$0xff] }
 0x14c   : > { %1601 = vmatprep.subr.bf16.mxu0 %v1834_v57  ;;  %1725 = vmatprep.subr.bf16.mxu1 %v1834_v57 }
 0x14f   : > { %1602 = vmatpush3.bf16.msra.mxu0 %v1835_v58  ;;  %1733 = vmatpush3.bf16.msra.mxu1 %v1835_v58 }
 0x150   : > { %1603 = vmatprep.subr.bf16.mxu0 %v1836_v59  ;;  %1726 = vmatprep.subr.bf16.mxu1 %v1836_v59  ;;  %v959_v59 = vld [vmem:[#allocation2 + $0x50] sm:$0xff] }
 0x153   : > { %1604 = vmatpush3.bf16.msra.mxu0 %v1837_v62  ;;  %1734 = vmatpush3.bf16.msra.mxu1 %v1837_v62 }
 0x154   : > { %1605 = vmatprep.subr.bf16.mxu0 %v1838_v63  ;;  %1727 = vmatprep.subr.bf16.mxu1 %v1838_v63 }
 0x157   : > { %1606 = vmatpush3.bf16.msra.mxu0 %v1839_v0  ;;  %1735 = vmatpush3.bf16.msra.mxu1 %v1839_v0 }
 0x158   : > { %1607 = vmatprep.subr.bf16.mxu0 %v1840_v1  ;;  %1728 = vmatprep.subr.bf16.mxu1 %v1840_v1 }
 0x15b   : > { %1608 = vmatpush3.bf16.msra.mxu0 %v1841_v2  ;;  %1736 = vmatpush3.bf16.msra.mxu1 %v1841_v2 }
 0x15e   : > { %1228 = vmatmul.mubr.bf16.vlgmr.msra.gmra.mxu0 %v1842_v3  ;;  %1260 = vmatmul.mubr.bf16.vlgmr.msra.gmra.mxu1 %v1845_v4 }
 0x15f   : > { %1235 = vmatprep.mubr.bf16.mxu0 %v1848_v5  ;;  %1267 = vmatprep.mubr.bf16.mxu1 %v1850_v6  ;;  %v960_v5 = vld [vmem:[#allocation2 + $0x68] sm:$0xff] }
 0x166   : > { %1236 = vmatmul.mubr.bf16.gmra.mxu0 %v1852_v7  ;;  %1268 = vmatmul.mubr.bf16.gmra.mxu1 %v1853_v8  ;;  %v968_v7 = vld [vmem:[#allocation2 + $0x70] sm:$0xff] }
 0x167   : > { %1243 = vmatprep.mubr.bf16.mxu0 %v1854_v9  ;;  %1275 = vmatprep.mubr.bf16.mxu1 %v1856_v10 }
 0x16e   : > { %1244 = vmatmul.mubr.bf16.gmra.mxu0 %v1858_v11  ;;  %1276 = vmatmul.mubr.bf16.gmra.mxu1 %v1859_v12 }
 0x16f   : > { %1251 = vmatprep.mubr.bf16.mxu0 %v1860_v13  ;;  %1283 = vmatprep.mubr.bf16.mxu1 %v1862_v14 }
 0x176   : > { %1252 = vmatmul.mubr.bf16.gmra.mxu0 %v1864_v15  ;;  %1284 = vmatmul.mubr.bf16.gmra.mxu1 %v1865_v16  ;;  %v961_v15 = vld [vmem:[#allocation2 + $0x8] sm:$0xff] }
 0x21e   : > { %v1609_v17 = vpop.f32.mrf.mxu0  ;;  %v1633_v18 = vpop.f32.mrf.mxu1 }
 0x220   : > { %v1610_v20 = vpop.f32.mrf.mxu0  ;;  %v1634_v22 = vpop.f32.mrf.mxu1 }
 0x221   : > { %v1611_v23 = vadd.f32 %v1610_v20, %v1609_v17  ;;  %v1635_v24 = vadd.f32 %v1634_v22, %v1633_v18  ;;  %v969_v17 = vld [vmem:[#allocation2 + $0x78] sm:$0xff] }
 0x222   : > { %v1612_v25 = vpop.f32.mrf.mxu0  ;;  %v1636_v26 = vpop.f32.mrf.mxu1 }
 0x223   : > { %v1292_v27 = vadd.f32 %v1611_v23, %v955_v19  ;;  %v1300_v28 = vadd.f32 %v1635_v24, %v963_v21 }
 0x224   : > { %v1613_v30 = vpop.f32.mrf.mxu0  ;;  %v1637_v32 = vpop.f32.mrf.mxu1 }
 0x225   : > { %1308 = vst [vmem:[#allocation2 + $0x30] sm:$0xff] %v1292_v27  ;;  %1316 = vst [vmem:[#allocation2 + $0x40] sm:$0xff] %v1300_v28  ;;  %v1614_v33 = vadd.f32 %v1613_v30, %v1612_v25  ;;  %v1638_v34 = vadd.f32 %v1637_v32, %v1636_v26  ;;  %v962_v25 = vld [vmem:[#allocation2 + $0x48] sm:$0xff] }
 0x226   : > { %v1615_v35 = vpop.f32.mrf.mxu0  ;;  %v1639_v36 = vpop.f32.mrf.mxu1  ;;  %v970_v27 = vld [vmem:[#allocation2 + $0x28] sm:$0xff] }
 0x227   : > { %v1293_v37 = vadd.f32 %v1614_v33, %v956_v29  ;;  %v1301_v38 = vadd.f32 %v1638_v34, %v964_v31 }
 0x228   : > { %v1616_v40 = vpop.f32.mrf.mxu0  ;;  %v1640_v42 = vpop.f32.mrf.mxu1 }
 0x229   : > { %1309 = vst [vmem:[#allocation2] sm:$0xff] %v1293_v37  ;;  %1317 = vst [vmem:[#allocation2 + $0x20] sm:$0xff] %v1301_v38  ;;  %v1617_v43 = vadd.f32 %v1616_v40, %v1615_v35  ;;  %v1641_v44 = vadd.f32 %v1640_v42, %v1639_v36 }
 0x22a   : > { %v1618_v45 = vpop.f32.mrf.mxu0  ;;  %v1642_v46 = vpop.f32.mrf.mxu1 }
 0x22b   : > { %v1294_v47 = vadd.f32 %v1617_v43, %v957_v39  ;;  %v1302_v48 = vadd.f32 %v1641_v44, %v965_v41 }
 0x22c   : > { %v1619_v51 = vpop.f32.mrf.mxu0  ;;  %v1643_v53 = vpop.f32.mrf.mxu1 }
 0x22d   : > { %1310 = vst [vmem:[#allocation2 + $0x58] sm:$0xff] %v1294_v47  ;;  %1318 = vst [vmem:[#allocation2 + $0x10] sm:$0xff] %v1302_v48  ;;  %v1620_v50 = vadd.f32 %v1619_v51, %v1618_v45  ;;  %v1644_v54 = vadd.f32 %v1643_v53, %v1642_v46 }
 0x22e   : > { %v1621_v55 = vpop.f32.mrf.mxu0  ;;  %v1645_v56 = vpop.f32.mrf.mxu1 }
 0x22f   : > { %v1295_v57 = vadd.f32 %v1620_v50, %v958_v49  ;;  %v1303_v58 = vadd.f32 %v1644_v54, %v966_v52 }
 0x230   : > { %v1622_v60 = vpop.f32.mrf.mxu0  ;;  %v1646_v62 = vpop.f32.mrf.mxu1 }
 0x231   : > { %1311 = vst [vmem:[#allocation2 + $0x18] sm:$0xff] %v1295_v57  ;;  %1319 = vst [vmem:[#allocation2 + $0x38] sm:$0xff] %v1303_v58  ;;  %v1623_v63 = vadd.f32 %v1622_v60, %v1621_v55  ;;  %v1647_v0 = vadd.f32 %v1646_v62, %v1645_v56 }
 0x232   : > { %v1624_v1 = vpop.f32.mrf.mxu0  ;;  %v1648_v2 = vpop.f32.mrf.mxu1 }
 0x233   : > { %v1296_v3 = vadd.f32 %v1623_v63, %v959_v59  ;;  %v1304_v4 = vadd.f32 %v1647_v0, %v967_v61 }
 0x234   : > { %v1625_v6 = vpop.f32.mrf.mxu0  ;;  %v1649_v8 = vpop.f32.mrf.mxu1 }
 0x235   : > { %1312 = vst [vmem:[#allocation2 + $0x50] sm:$0xff] %v1296_v3  ;;  %1320 = vst [vmem:[#allocation2 + $0x60] sm:$0xff] %v1304_v4  ;;  %v1626_v9 = vadd.f32 %v1625_v6, %v1624_v1  ;;  %v1650_v10 = vadd.f32 %v1649_v8, %v1648_v2 }
 0x236   : > { %v1627_v11 = vpop.f32.mrf.mxu0  ;;  %v1651_v12 = vpop.f32.mrf.mxu1 }
 0x237   : > { %v1297_v13 = vadd.f32 %v1626_v9, %v960_v5  ;;  %v1305_v14 = vadd.f32 %v1650_v10, %v968_v7 }
 0x238   : > { %v1628_v16 = vpop.f32.mrf.mxu0  ;;  %v1652_v18 = vpop.f32.mrf.mxu1 }
 0x239   : > { %1313 = vst [vmem:[#allocation2 + $0x68] sm:$0xff] %v1297_v13  ;;  %1321 = vst [vmem:[#allocation2 + $0x70] sm:$0xff] %v1305_v14  ;;  %v1629_v19 = vadd.f32 %v1628_v16, %v1627_v11  ;;  %v1653_v20 = vadd.f32 %v1652_v18, %v1651_v12 }
 0x23a   : > { %v1630_v21 = vpop.f32.mrf.mxu0  ;;  %v1654_v22 = vpop.f32.mrf.mxu1 }
 0x23b   : > { %v1298_v23 = vadd.f32 %v1629_v19, %v961_v15  ;;  %v1306_v24 = vadd.f32 %v1653_v20, %v969_v17 }
 0x23c   : > { %v1631_v26 = vpop.f32.mrf.mxu0  ;;  %v1655_v28 = vpop.f32.mrf.mxu1 }
 0x23d   : > { %1314 = vst [vmem:[#allocation2 + $0x8] sm:$0xff] %v1298_v23  ;;  %1322 = vst [vmem:[#allocation2 + $0x78] sm:$0xff] %v1306_v24  ;;  %v1632_v29 = vadd.f32 %v1631_v26, %v1630_v21  ;;  %v1656_v30 = vadd.f32 %v1655_v28, %v1654_v22  ;;  %1327 = sbr.rel (%p1558_p13) target bundleno = 587 (0x24b), region = 94 }
 0x23f   : > { %v1299_v31 = vadd.f32 %v1632_v29, %v962_v25  ;;  %v1307_v32 = vadd.f32 %v1656_v30, %v970_v27 }
 0x241   : > { %1315 = vst [vmem:[#allocation2 + $0x48] sm:$0xff] %v1299_v31  ;;  %1323 = vst [vmem:[#allocation2 + $0x28] sm:$0xff] %v1307_v32 }
 0x242   : > { %v1328_v33 = vld [vmem:[#allocation2 + $0x30] sm:$0xff]  ;;  %v1329_v34 = vld [vmem:[#allocation2] sm:$0xff]  ;;  %v1330_v35 = vld [vmem:[#allocation2 + $0x58] sm:$0xff] }
 0x243   : > { %1344 = vst [vmem:[%s2058_s10] sm:$0xff] %v1328_v33  ;;  %1345 = vst [vmem:[%s2058_s10 + $0x8] sm:$0xff] %v1329_v34  ;;  %v1331_v36 = vld [vmem:[#allocation2 + $0x18] sm:$0xff]  ;;  %v1332_v37 = vld [vmem:[#allocation2 + $0x50] sm:$0xff] }
 0x244   : > { %1346 = vst [vmem:[%s2058_s10 + $0x10] sm:$0xff] %v1330_v35  ;;  %v1333_v38 = vld [vmem:[#allocation2 + $0x68] sm:$0xff]  ;;  %1347 = vst [vmem:[%s2058_s10 + $0x18] sm:$0xff] %v1331_v36  ;;  %v1336_v41 = vld [vmem:[#allocation2 + $0x40] sm:$0xff] }
 0x245   : > { %1348 = vst [vmem:[%s2058_s10 + $0x20] sm:$0xff] %v1332_v37  ;;  %1349 = vst [vmem:[%s2058_s10 + $0x28] sm:$0xff] %v1333_v38  ;;  %v1334_v39 = vld [vmem:[#allocation2 + $0x8] sm:$0xff]  ;;  %v1337_v42 = vld [vmem:[#allocation2 + $0x20] sm:$0xff] }
 0x246   : > { %1350 = vst [vmem:[%s2058_s10 + $0x30] sm:$0xff] %v1334_v39  ;;  %1352 = vst [vmem:[%s2058_s10 + $0x40] sm:$0xff] %v1336_v41  ;;  %v1338_v43 = vld [vmem:[#allocation2 + $0x10] sm:$0xff]  ;;  %v1339_v44 = vld [vmem:[#allocation2 + $0x38] sm:$0xff] }
 0x247   : > { %1353 = vst [vmem:[%s2058_s10 + $0x48] sm:$0xff] %v1337_v42  ;;  %1354 = vst [vmem:[%s2058_s10 + $0x50] sm:$0xff] %v1338_v43  ;;  %v1340_v45 = vld [vmem:[#allocation2 + $0x60] sm:$0xff]  ;;  %v1341_v46 = vld [vmem:[#allocation2 + $0x70] sm:$0xff] }
 0x248   : > { %v1335_v40 = vld [vmem:[#allocation2 + $0x48] sm:$0xff]  ;;  %1355 = vst [vmem:[%s2058_s10 + $0x58] sm:$0xff] %v1339_v44  ;;  %v1342_v47 = vld [vmem:[#allocation2 + $0x78] sm:$0xff]  ;;  %1356 = vst [vmem:[%s2058_s10 + $0x60] sm:$0xff] %v1340_v45 }
 0x249   : > { %1351 = vst [vmem:[%s2058_s10 + $0x38] sm:$0xff] %v1335_v40  ;;  %1357 = vst [vmem:[%s2058_s10 + $0x68] sm:$0xff] %v1341_v46  ;;  %v1343_v48 = vld [vmem:[#allocation2 + $0x28] sm:$0xff] }
 0x24a   : > { %1358 = vst [vmem:[%s2058_s10 + $0x70] sm:$0xff] %v1342_v47  ;;  %1359 = vst [vmem:[%s2058_s10 + $0x78] sm:$0xff] %v1343_v48 }
 0x24b PF: > { %s17_s30 = sadd.s32 1, %s1920_s30   ;;  %s2235_s20 = sld [smem:[#allocation4_spill]] }
 0x24c   : > { %p14_p0 = scmp.ge.s32.totalorder %s17_s30, 8   ;;  %s2236_s24 = smov %s1900_s25 }
 0x24d   : > { %s2237_s25 = smov %s2013_s14  ;;  %s2238_s26 = smov %s1912_s28 }
 0x24e   : > { %s2239_s27 = smov %s1916_s29  ;;  %s2240_s28 = smov %s2243_s8 }
 0x24f   :  { %16 = sbr.rel (!%p14_p0) target bundleno = 6 (0x6), region = 138 }
 0x251   : > { %s2241_s29 = smov %s2235_s20 }

</bundles_post_ra>
